<compile_context>
chip_gen: v5e
topology: v5e:2x2
jax: 0.10.0
libtpu: 0.0.40
codegen_flags: <defaults>
</compile_context>

<pallas_src>
import functools
import math

import jax
import jax.numpy as jnp
from jax.experimental import pallas as pl
from jax.experimental.pallas import tpu as pltpu


# ---------------------------------------------------------------------------
# small helpers
# ---------------------------------------------------------------------------

def _round_up(n, m):
    return ((n + m - 1) // m) * m


def _pad128(n):
    return max(128, _round_up(n, 128))


def _dot(a, w_bf16):
    """MXU matmul: activations cast to bf16, weights stored bf16, f32 accumulation."""
    return jnp.dot(a.astype(jnp.bfloat16), w_bf16, preferred_element_type=jnp.float32)


def _relu(x):
    return jnp.maximum(x, 0.0)


def _sigmoid(x):
    # numerically stable sigmoid: exp(-|x|) never overflows; exp runs on the EUP
    z = jnp.exp(-jnp.abs(x))
    inv = 1.0 / (1.0 + z)
    return jnp.where(x >= 0.0, inv, z * inv)


# ---------------------------------------------------------------------------
# Kernel 1: ResNet M message MLP, tiled over edges
# ---------------------------------------------------------------------------

def _message_kernel(xs_ref, wi, bi, wh, bh, wo, o_ref, *, depth, tile_e, n_edges):
    h = _relu(_dot(xs_ref[...], wi[...]) + bi[...])
    for d in range(depth):                       # static unroll
        h = h + _relu(_dot(h, wh[d]) + bh[d])
    msg = _dot(h, wo[...])                       # (tile_e, Cout_p) f32
    # zero padded edge rows so the downstream exact f32 scatter-add is unaffected
    eid = pl.program_id(0) * tile_e + jax.lax.broadcasted_iota(jnp.int32, msg.shape, 0)
    o_ref[...] = jnp.where(eid < n_edges, msg, 0.0)


# ---------------------------------------------------------------------------
# Kernel 2: fused S/R/E MLPs + V combine (+ skip), tiled over nodes
# ---------------------------------------------------------------------------

def _update_kernel(agg_ref, *rest, depth, width, add_skip):
    if add_skip:
        x_ref, rest = rest[0], rest[1:]
    (wi_cat, bi_cat,
     s_wh, s_bh, s_wo,
     r_wh, r_bh, r_wo,
     e_wh, e_bh, e_wo, o_ref) = rest

    agg = agg_ref[...]                                       # (tile_n, Cout_p) f32
    # S/R/E input layers share the same LHS -> one lane-dense (Cout_p, 3W) matmul
    h = _dot(agg, wi_cat[...]) + bi_cat[...]
    hs = _sigmoid(h[:, :width])               # S: FFNet, sigmoid
    hr = _relu(h[:, width:2 * width])         # R: ResNet, relu
    he = _relu(h[:, 2 * width:])              # E: FFNet, relu
    for d in range(depth):
        hs = _sigmoid(_dot(hs, s_wh[d]) + s_bh[d])
    for d in range(depth):
        hr = hr + _relu(_dot(hr, r_wh[d]) + r_bh[d])
    for d in range(depth):
        he = _relu(_dot(he, e_wh[d]) + e_bh[d])
    s = _dot(hs, s_wo[...])    # column-replicated S head -> scalar already lane-broadcast
    r = _dot(hr, r_wo[...])
    e = _dot(he, e_wo[...])
    out = s * (r + e * agg)
    if add_skip:
        out = out + x_ref[...]
    o_ref[...] = out


# ---------------------------------------------------------------------------
# Per-layer wrapper: two tiled pallas_calls + index-driven gather/scatter glue
# ---------------------------------------------------------------------------

def _invariant_spec(shape):
    nd = len(shape)
    return pl.BlockSpec(shape, lambda i, _nd=nd: (0,) * _nd)   # grid-invariant block


_VMEM_LIMIT = 32 * 1024 * 1024     # explicit scoped-VMEM budget (safe on v5e/v6e/v7x)


def conv_forward(p, meta, x_pad, src, dst, n_edges, *, add_skip, tile_e, tile_n):
    n_pad, cin_p = x_pad.shape
    cout_p, wv_p = meta['cout_p'], meta['wv_p']
    e_pad = src.shape[0]

    # 1) gather x_j = x[src] (index-driven; padded edges read row 0, masked in-kernel)
    # TODO(synk): replace with in-kernel DMA row gather over an HBM x ref (scalar-prefetched src).
    x_src = jnp.take(x_pad, src, axis=0)                       # (E_pad, Cin_p) f32

    # 2) message MLP, tiled over edges, pipelined; weights grid-invariant
    mwi, mbi, mwh, mbh, mwo = p['m']
    msgs = pl.pallas_call(
        functools.partial(_message_kernel, depth=meta['m_depth'],
                          tile_e=tile_e, n_edges=n_edges),
        grid=(e_pad // tile_e,),
        in_specs=[pl.BlockSpec((tile_e, cin_p), lambda i: (i, 0)),
                  _invariant_spec(mwi.shape), _invariant_spec(mbi.shape),
                  _invariant_spec(mwh.shape), _invariant_spec(mbh.shape),
                  _invariant_spec(mwo.shape)],
        out_specs=pl.BlockSpec((tile_e, cout_p), lambda i: (i, 0)),
        out_shape=jax.ShapeDtypeStruct((e_pad, cout_p), jnp.float32),
        compiler_params=pltpu.CompilerParams(
            dimension_semantics=("parallel",), vmem_limit_bytes=_VMEM_LIMIT),
    )(x_src, mwi, mbi, mwh, mbh, mwo)

    # 3) sum-aggregate messages at dst (exact f32 scatter-add; padded msgs are zero)
    # TODO(synk): dst-sorted in-kernel segment-sum driven by scalar-prefetched group offsets.
    agg = jnp.zeros((n_pad, cout_p), jnp.float32).at[dst].add(msgs)

    # 4) fused S/R/E update + combine (+ skip), tiled over nodes, pipelined
    s_wh, s_bh, s_wo = p['s']
    r_wh, r_bh, r_wo = p['r']
    e_wh, e_bh, e_wo = p['e']
    args = [agg]
    in_specs = [pl.BlockSpec((tile_n, cout_p), lambda i: (i, 0))]
    if add_skip:
        args.append(x_pad)
        in_specs.append(pl.BlockSpec((tile_n, cin_p), lambda i: (i, 0)))
    weights = [p['sre_wi'], p['sre_bi'],
               s_wh, s_bh, s_wo, r_wh, r_bh, r_wo, e_wh, e_bh, e_wo]
    args += weights
    in_specs += [_invariant_spec(w.shape) for w in weights]

    return pl.pallas_call(
        functools.partial(_update_kernel, depth=meta['v_depth'],
                          width=wv_p, add_skip=add_skip),
        grid=(n_pad // tile_n,),
        in_specs=in_specs,
        out_specs=pl.BlockSpec((tile_n, cout_p), lambda i: (i, 0)),
        out_shape=jax.ShapeDtypeStruct((n_pad, cout_p), jnp.float32),
        compiler_params=pltpu.CompilerParams(
            dimension_semantics=("parallel",), vmem_limit_bytes=_VMEM_LIMIT),
    )(*args)


# ---------------------------------------------------------------------------
# Parameter init: PyTorch nn.Linear init, zero-padded to 128 lanes, bf16 weights
# (zero padding rows/cols keeps the padded network exactly equal to the logical one)
# ---------------------------------------------------------------------------

def _init_linear(key, fan_in, fan_out, bias=True):
    kw, kb = jax.random.split(key)
    bound = 1.0 / math.sqrt(fan_in)
    w = jax.random.uniform(kw, (fan_in, fan_out), jnp.float32, -bound, bound)
    b = (jax.random.uniform(kb, (1, fan_out), jnp.float32, -bound, bound)
         if bias else None)
    return w, b


def _pad2(a, rows, cols):
    return jnp.pad(a, ((0, rows - a.shape[0]), (0, cols - a.shape[1])))


def _init_net(key, d_in, d_out, width, depth, pad_in, pad_out, pad_w, replicate_out=None):
    """FFNet/ResNet: linearIn (bias), `depth` hidden (bias), linearOut (no bias)."""
    keys = jax.random.split(key, depth + 2)
    wi, bi = _init_linear(keys[0], d_in, width)
    wi, bi = _pad2(wi, pad_in, pad_w), _pad2(bi, 1, pad_w)
    whs, bhs = [], []
    for i in range(depth):
        w, b = _init_linear(keys[1 + i], width, width)
        whs.append(_pad2(w, pad_w, pad_w))
        bhs.append(_pad2(b, 1, pad_w))
    wo, _ = _init_linear(keys[-1], width, d_out, bias=False)
    if replicate_out is not None:             # lane-dense broadcast of a (width, 1) head
        wo = jnp.tile(wo, (1, replicate_out))
    wo = _pad2(wo, pad_w, pad_out)
    return (wi.astype(jnp.bfloat16), bi,
            jnp.stack(whs).astype(jnp.bfloat16), jnp.stack(bhs),
            wo.astype(jnp.bfloat16))


def init_conv(key, in_ch, out_ch, v_width, v_depth, m_width, m_depth):
    k_m, k_s, k_r, k_e = jax.random.split(key, 4)
    cin_p, cout_p = _pad128(in_ch), _pad128(out_ch)
    wm_p, wv_p = _pad128(m_width), _pad128(v_width)

    m = _init_net(k_m, in_ch, out_ch, m_width, m_depth, cin_p, cout_p, wm_p)     # ResNet M
    s = _init_net(k_s, out_ch, 1, v_width, v_depth, cout_p, cout_p, wv_p,
                  replicate_out=cout_p)                                          # FFNet  S
    r = _init_net(k_r, out_ch, out_ch, v_width, v_depth, cout_p, cout_p, wv_p)   # ResNet R
    e = _init_net(k_e, out_ch, out_ch, v_width, v_depth, cout_p, cout_p, wv_p)   # FFNet  E

    params = dict(
        m=m,
        # S/R/E input layers fused along the output dim (shared LHS -> one wide matmul)
        sre_wi=jnp.concatenate([s[0], r[0], e[0]], axis=1),
        sre_bi=jnp.concatenate([s[1], r[1], e[1]], axis=1),
        s=(s[2], s[3], s[4]),
        r=(r[2], r[3], r[4]),
        e=(e[2], e[3], e[4]),
    )
    meta = dict(in_ch=in_ch, out_ch=out_ch, cin_p=cin_p, cout_p=cout_p,
                wv_p=wv_p, wm_p=wm_p, m_depth=m_depth, v_depth=v_depth)
    return params, meta


def init_mygcn4(key, n_layers, in_ch, hid_ch, v_width, v_depth, m_width, m_depth):
    keys = jax.random.split(key, n_layers)
    chans = [(in_ch, hid_ch)] + [(hid_ch, hid_ch)] * (n_layers - 2) + [(hid_ch, in_ch)]
    params, meta = [], []
    for k, (ci, co) in zip(keys, chans):
        p, mm = init_conv(k, ci, co, v_width, v_depth, m_width, m_depth)
        params.append(p)
        meta.append(mm)
    return params, meta


# ---------------------------------------------------------------------------
# Full forward pass
# ---------------------------------------------------------------------------

def mygcn4_forward(params, meta, x, edge_index, *, skip_connection=True,
                   activation_func=None, tile_e=512, tile_n=512):
    n_nodes, in_ch = x.shape
    n_edges = edge_index.shape[1]

    # tiles clamped to the (8-padded) problem; node/edge counts padded to tile multiples
    tn = min(tile_n, _round_up(n_nodes, 8))
    te = min(tile_e, _round_up(n_edges, 8))
    n_pad = _round_up(n_nodes, tn)
    e_pad = _round_up(n_edges, te)

    cin_p0 = meta[0]['cin_p']
    x_pad = jnp.zeros((n_pad, cin_p0), jnp.float32)
    x_pad = x_pad.at[:n_nodes, :in_ch].set(x.astype(jnp.float32))

    src = jnp.pad(edge_index[0].astype(jnp.int32), (0, e_pad - n_edges))   # pad -> row 0
    dst = jnp.pad(edge_index[1].astype(jnp.int32), (0, e_pad - n_edges))   # padded msgs are 0

    for p, mm in zip(params, meta):
        if skip_connection and mm['in_ch'] != mm['out_ch']:
            raise ValueError("skip_connection requires in_channels == out_channels "
                             f"(got {mm['in_ch']} vs {mm['out_ch']})")
        x_pad = conv_forward(p, mm, x_pad, src, dst, n_edges,
                             add_skip=skip_connection, tile_e=te, tile_n=tn)
        if activation_func is not None:
            x_pad = activation_func(x_pad)
    return x_pad[:n_nodes, :in_ch]


# ---------------------------------------------------------------------------
# Demo
# ---------------------------------------------------------------------------

if __name__ == "__main__":
    key = jax.random.PRNGKey(0)
    N_NODES, N_EDGES = 8, 16
    IN_CH = HID_CH = 16          # equal so skip_connection is shape-valid (as in PyTorch)
    V_WIDTH, V_DEPTH = 32, 2
    M_WIDTH, M_DEPTH = 32, 2
    N_LAYERS = 3

    k_x, k_src, k_dst, k_p = jax.random.split(key, 4)
    x = jax.random.normal(k_x, (N_NODES, IN_CH), dtype=jnp.float32)
    src = jax.random.randint(k_src, (N_EDGES,), 0, N_NODES)
    dst = jax.random.randint(k_dst, (N_EDGES,), 0, N_NODES)
    edge_index = jnp.stack([src, dst])   # [2, E], row 0 = source j, row 1 = target i

    params, meta = init_mygcn4(k_p, N_LAYERS, IN_CH, HID_CH,
                               V_WIDTH, V_DEPTH, M_WIDTH, M_DEPTH)

    @jax.jit
    def run(p, xx, ei):
        return mygcn4_forward(p, meta, xx, ei, skip_connection=True,
                              activation_func=None)

    out = jax.block_until_ready(run(params, x, edge_index))
    assert out.shape == (N_NODES, IN_CH) and out.dtype == jnp.float32
    assert bool(jnp.all(jnp.isfinite(out)))
    print("KERNEL_OK")
</pallas_src>

<mosaic_0001>
module attributes {stable_mosaic.version = 11 : i64} {
  func.func @_update_kernel(%arg0: i32, %arg1: memref<8x128xf32, #tpu.memory_space<vmem>>, %arg2: memref<8x128xf32, #tpu.memory_space<vmem>>, %arg3: memref<128x384xbf16, #tpu.memory_space<vmem>>, %arg4: memref<1x384xf32, #tpu.memory_space<vmem>>, %arg5: memref<2x128x128xbf16, #tpu.memory_space<vmem>>, %arg6: memref<2x1x128xf32, #tpu.memory_space<vmem>>, %arg7: memref<128x128xbf16, #tpu.memory_space<vmem>>, %arg8: memref<2x128x128xbf16, #tpu.memory_space<vmem>>, %arg9: memref<2x1x128xf32, #tpu.memory_space<vmem>>, %arg10: memref<128x128xbf16, #tpu.memory_space<vmem>>, %arg11: memref<2x128x128xbf16, #tpu.memory_space<vmem>>, %arg12: memref<2x1x128xf32, #tpu.memory_space<vmem>>, %arg13: memref<128x128xbf16, #tpu.memory_space<vmem>>, %arg14: memref<8x128xf32, #tpu.memory_space<vmem>>) attributes {dimension_semantics = [#tpu.dimension_semantics<parallel>], iteration_bounds = array<i64: 1>, scalar_prefetch = 0 : i64, scratch_operands = 0 : i64, tpu.core_type = #tpu.core_type<tc>, window_params = [{transform_indices = @transform_0, window_bounds = array<i64: 8, 128>}, {transform_indices = @transform_1, window_bounds = array<i64: 8, 128>}, {pipeline_mode = #tpu.pipeline_mode<synchronous>, transform_indices = @transform_2, window_bounds = array<i64: 128, 384>}, {pipeline_mode = #tpu.pipeline_mode<synchronous>, transform_indices = @transform_3, window_bounds = array<i64: 1, 384>}, {pipeline_mode = #tpu.pipeline_mode<synchronous>, transform_indices = @transform_4, window_bounds = array<i64: 2, 128, 128>}, {pipeline_mode = #tpu.pipeline_mode<synchronous>, transform_indices = @transform_5, window_bounds = array<i64: 2, 1, 128>}, {pipeline_mode = #tpu.pipeline_mode<synchronous>, transform_indices = @transform_6, window_bounds = array<i64: 128, 128>}, {pipeline_mode = #tpu.pipeline_mode<synchronous>, transform_indices = @transform_7, window_bounds = array<i64: 2, 128, 128>}, {pipeline_mode = #tpu.pipeline_mode<synchronous>, transform_indices = @transform_8, window_bounds = array<i64: 2, 1, 128>}, {pipeline_mode = #tpu.pipeline_mode<synchronous>, transform_indices = @transform_9, window_bounds = array<i64: 128, 128>}, {pipeline_mode = #tpu.pipeline_mode<synchronous>, transform_indices = @transform_10, window_bounds = array<i64: 2, 128, 128>}, {pipeline_mode = #tpu.pipeline_mode<synchronous>, transform_indices = @transform_11, window_bounds = array<i64: 2, 1, 128>}, {pipeline_mode = #tpu.pipeline_mode<synchronous>, transform_indices = @transform_12, window_bounds = array<i64: 128, 128>}, {transform_indices = @transform_13, window_bounds = array<i64: 8, 128>}]} {
    %c0 = arith.constant 0 : index
    %c0_0 = arith.constant 0 : index
    %0 = vector.load %arg1[%c0, %c0_0] : memref<8x128xf32, #tpu.memory_space<vmem>>, vector<8x128xf32>
    %c0_1 = arith.constant 0 : index
    %c0_2 = arith.constant 0 : index
    %1 = vector.load %arg3[%c0_1, %c0_2] : memref<128x384xbf16, #tpu.memory_space<vmem>>, vector<128x384xbf16>
    %2 = arith.truncf %0 : vector<8x128xf32> to vector<8x128xbf16>
    %cst = arith.constant dense<0.000000e+00> : vector<8x384xf32>
    %3 = tpu.matmul %2, %1, %cst {dimension_numbers = #tpu.dot_dimension_numbers<[1], [0], [0], [1], [0, 0, 1, 1], [], []>} : vector<8x128xbf16>, vector<128x384xbf16>, vector<8x384xf32> -> vector<8x384xf32>
    %c0_3 = arith.constant 0 : index
    %c0_4 = arith.constant 0 : index
    %4 = vector.load %arg4[%c0_3, %c0_4] : memref<1x384xf32, #tpu.memory_space<vmem>>, vector<1x384xf32>
    %5 = vector.broadcast %4 : vector<1x384xf32> to vector<8x384xf32>
    %6 = arith.addf %3, %5 : vector<8x384xf32>
    %7 = vector.extract_strided_slice %6 {offsets = [0, 0], sizes = [8, 128], strides = [1, 1]} : vector<8x384xf32> to vector<8x128xf32>
    %8 = math.absf %7 : vector<8x128xf32>
    %cst_5 = arith.constant 0.000000e+00 : f32
    %9 = vector.broadcast %cst_5 : f32 to vector<8x128xf32>
    %10 = arith.subf %9, %8 : vector<8x128xf32>
    %11 = math.exp %10 : vector<8x128xf32>
    %cst_6 = arith.constant 1.000000e+00 : f32
    %12 = vector.broadcast %cst_6 : f32 to vector<8x128xf32>
    %13 = arith.addf %12, %11 : vector<8x128xf32>
    %cst_7 = arith.constant 1.000000e+00 : f32
    %14 = vector.broadcast %cst_7 : f32 to vector<8x128xf32>
    %15 = arith.divf %14, %13 : vector<8x128xf32>
    %cst_8 = arith.constant 0.000000e+00 : f32
    %16 = vector.broadcast %cst_8 : f32 to vector<8x128xf32>
    %17 = arith.cmpf oge, %7, %16 : vector<8x128xf32>
    %18 = arith.mulf %11, %15 : vector<8x128xf32>
    %19 = arith.select %17, %15, %18 : vector<8x128xi1>, vector<8x128xf32>
    %20 = vector.extract_strided_slice %6 {offsets = [0, 128], sizes = [8, 128], strides = [1, 1]} : vector<8x384xf32> to vector<8x128xf32>
    %cst_9 = arith.constant 0.000000e+00 : f32
    %21 = vector.broadcast %cst_9 : f32 to vector<8x128xf32>
    %22 = arith.maximumf %20, %21 : vector<8x128xf32>
    %23 = vector.extract_strided_slice %6 {offsets = [0, 256], sizes = [8, 128], strides = [1, 1]} : vector<8x384xf32> to vector<8x128xf32>
    %cst_10 = arith.constant 0.000000e+00 : f32
    %24 = vector.broadcast %cst_10 : f32 to vector<8x128xf32>
    %25 = arith.maximumf %23, %24 : vector<8x128xf32>
    %c0_11 = arith.constant 0 : index
    %c0_12 = arith.constant 0 : index
    %c0_13 = arith.constant 0 : index
    %26 = vector.load %arg5[%c0_11, %c0_12, %c0_13] : memref<2x128x128xbf16, #tpu.memory_space<vmem>>, vector<1x128x128xbf16>
    %27 = vector.shape_cast %26 : vector<1x128x128xbf16> to vector<128x128xbf16>
    %28 = arith.truncf %19 : vector<8x128xf32> to vector<8x128xbf16>
    %cst_14 = arith.constant dense<0.000000e+00> : vector<8x128xf32>
    %29 = tpu.matmul %28, %27, %cst_14 {dimension_numbers = #tpu.dot_dimension_numbers<[1], [0], [0], [1], [0, 0, 1, 1], [], []>} : vector<8x128xbf16>, vector<128x128xbf16>, vector<8x128xf32> -> vector<8x128xf32>
    %c0_15 = arith.constant 0 : index
    %c0_16 = arith.constant 0 : index
    %c0_17 = arith.constant 0 : index
    %30 = vector.load %arg6[%c0_15, %c0_16, %c0_17] : memref<2x1x128xf32, #tpu.memory_space<vmem>>, vector<1x1x128xf32>
    %31 = vector.shape_cast %30 : vector<1x1x128xf32> to vector<1x128xf32>
    %32 = vector.broadcast %31 : vector<1x128xf32> to vector<8x128xf32>
    %33 = arith.addf %29, %32 : vector<8x128xf32>
    %34 = math.absf %33 : vector<8x128xf32>
    %cst_18 = arith.constant 0.000000e+00 : f32
    %35 = vector.broadcast %cst_18 : f32 to vector<8x128xf32>
    %36 = arith.subf %35, %34 : vector<8x128xf32>
    %37 = math.exp %36 : vector<8x128xf32>
    %cst_19 = arith.constant 1.000000e+00 : f32
    %38 = vector.broadcast %cst_19 : f32 to vector<8x128xf32>
    %39 = arith.addf %38, %37 : vector<8x128xf32>
    %cst_20 = arith.constant 1.000000e+00 : f32
    %40 = vector.broadcast %cst_20 : f32 to vector<8x128xf32>
    %41 = arith.divf %40, %39 : vector<8x128xf32>
    %cst_21 = arith.constant 0.000000e+00 : f32
    %42 = vector.broadcast %cst_21 : f32 to vector<8x128xf32>
    %43 = arith.cmpf oge, %33, %42 : vector<8x128xf32>
    %44 = arith.mulf %37, %41 : vector<8x128xf32>
    %45 = arith.select %43, %41, %44 : vector<8x128xi1>, vector<8x128xf32>
    %c1 = arith.constant 1 : index
    %c0_22 = arith.constant 0 : index
    %c0_23 = arith.constant 0 : index
    %46 = vector.load %arg5[%c1, %c0_22, %c0_23] : memref<2x128x128xbf16, #tpu.memory_space<vmem>>, vector<1x128x128xbf16>
    %47 = vector.shape_cast %46 : vector<1x128x128xbf16> to vector<128x128xbf16>
    %48 = arith.truncf %45 : vector<8x128xf32> to vector<8x128xbf16>
    %cst_24 = arith.constant dense<0.000000e+00> : vector<8x128xf32>
    %49 = tpu.matmul %48, %47, %cst_24 {dimension_numbers = #tpu.dot_dimension_numbers<[1], [0], [0], [1], [0, 0, 1, 1], [], []>} : vector<8x128xbf16>, vector<128x128xbf16>, vector<8x128xf32> -> vector<8x128xf32>
    %c1_25 = arith.constant 1 : index
    %c0_26 = arith.constant 0 : index
    %c0_27 = arith.constant 0 : index
    %50 = vector.load %arg6[%c1_25, %c0_26, %c0_27] : memref<2x1x128xf32, #tpu.memory_space<vmem>>, vector<1x1x128xf32>
    %51 = vector.shape_cast %50 : vector<1x1x128xf32> to vector<1x128xf32>
    %52 = vector.broadcast %51 : vector<1x128xf32> to vector<8x128xf32>
    %53 = arith.addf %49, %52 : vector<8x128xf32>
    %54 = math.absf %53 : vector<8x128xf32>
    %cst_28 = arith.constant 0.000000e+00 : f32
    %55 = vector.broadcast %cst_28 : f32 to vector<8x128xf32>
    %56 = arith.subf %55, %54 : vector<8x128xf32>
    %57 = math.exp %56 : vector<8x128xf32>
    %cst_29 = arith.constant 1.000000e+00 : f32
    %58 = vector.broadcast %cst_29 : f32 to vector<8x128xf32>
    %59 = arith.addf %58, %57 : vector<8x128xf32>
    %cst_30 = arith.constant 1.000000e+00 : f32
    %60 = vector.broadcast %cst_30 : f32 to vector<8x128xf32>
    %61 = arith.divf %60, %59 : vector<8x128xf32>
    %cst_31 = arith.constant 0.000000e+00 : f32
    %62 = vector.broadcast %cst_31 : f32 to vector<8x128xf32>
    %63 = arith.cmpf oge, %53, %62 : vector<8x128xf32>
    %64 = arith.mulf %57, %61 : vector<8x128xf32>
    %65 = arith.select %63, %61, %64 : vector<8x128xi1>, vector<8x128xf32>
    %c0_32 = arith.constant 0 : index
    %c0_33 = arith.constant 0 : index
    %c0_34 = arith.constant 0 : index
    %66 = vector.load %arg8[%c0_32, %c0_33, %c0_34] : memref<2x128x128xbf16, #tpu.memory_space<vmem>>, vector<1x128x128xbf16>
    %67 = vector.shape_cast %66 : vector<1x128x128xbf16> to vector<128x128xbf16>
    %68 = arith.truncf %22 : vector<8x128xf32> to vector<8x128xbf16>
    %cst_35 = arith.constant dense<0.000000e+00> : vector<8x128xf32>
    %69 = tpu.matmul %68, %67, %cst_35 {dimension_numbers = #tpu.dot_dimension_numbers<[1], [0], [0], [1], [0, 0, 1, 1], [], []>} : vector<8x128xbf16>, vector<128x128xbf16>, vector<8x128xf32> -> vector<8x128xf32>
    %c0_36 = arith.constant 0 : index
    %c0_37 = arith.constant 0 : index
    %c0_38 = arith.constant 0 : index
    %70 = vector.load %arg9[%c0_36, %c0_37, %c0_38] : memref<2x1x128xf32, #tpu.memory_space<vmem>>, vector<1x1x128xf32>
    %71 = vector.shape_cast %70 : vector<1x1x128xf32> to vector<1x128xf32>
    %72 = vector.broadcast %71 : vector<1x128xf32> to vector<8x128xf32>
    %73 = arith.addf %69, %72 : vector<8x128xf32>
    %cst_39 = arith.constant 0.000000e+00 : f32
    %74 = vector.broadcast %cst_39 : f32 to vector<8x128xf32>
    %75 = arith.maximumf %73, %74 : vector<8x128xf32>
    %76 = arith.addf %22, %75 : vector<8x128xf32>
    %c1_40 = arith.constant 1 : index
    %c0_41 = arith.constant 0 : index
    %c0_42 = arith.constant 0 : index
    %77 = vector.load %arg8[%c1_40, %c0_41, %c0_42] : memref<2x128x128xbf16, #tpu.memory_space<vmem>>, vector<1x128x128xbf16>
    %78 = vector.shape_cast %77 : vector<1x128x128xbf16> to vector<128x128xbf16>
    %79 = arith.truncf %76 : vector<8x128xf32> to vector<8x128xbf16>
    %cst_43 = arith.constant dense<0.000000e+00> : vector<8x128xf32>
    %80 = tpu.matmul %79, %78, %cst_43 {dimension_numbers = #tpu.dot_dimension_numbers<[1], [0], [0], [1], [0, 0, 1, 1], [], []>} : vector<8x128xbf16>, vector<128x128xbf16>, vector<8x128xf32> -> vector<8x128xf32>
    %c1_44 = arith.constant 1 : index
    %c0_45 = arith.constant 0 : index
    %c0_46 = arith.constant 0 : index
    %81 = vector.load %arg9[%c1_44, %c0_45, %c0_46] : memref<2x1x128xf32, #tpu.memory_space<vmem>>, vector<1x1x128xf32>
    %82 = vector.shape_cast %81 : vector<1x1x128xf32> to vector<1x128xf32>
    %83 = vector.broadcast %82 : vector<1x128xf32> to vector<8x128xf32>
    %84 = arith.addf %80, %83 : vector<8x128xf32>
    %cst_47 = arith.constant 0.000000e+00 : f32
    %85 = vector.broadcast %cst_47 : f32 to vector<8x128xf32>
    %86 = arith.maximumf %84, %85 : vector<8x128xf32>
    %87 = arith.addf %76, %86 : vector<8x128xf32>
    %c0_48 = arith.constant 0 : index
    %c0_49 = arith.constant 0 : index
    %c0_50 = arith.constant 0 : index
    %88 = vector.load %arg11[%c0_48, %c0_49, %c0_50] : memref<2x128x128xbf16, #tpu.memory_space<vmem>>, vector<1x128x128xbf16>
    %89 = vector.shape_cast %88 : vector<1x128x128xbf16> to vector<128x128xbf16>
    %90 = arith.truncf %25 : vector<8x128xf32> to vector<8x128xbf16>
    %cst_51 = arith.constant dense<0.000000e+00> : vector<8x128xf32>
    %91 = tpu.matmul %90, %89, %cst_51 {dimension_numbers = #tpu.dot_dimension_numbers<[1], [0], [0], [1], [0, 0, 1, 1], [], []>} : vector<8x128xbf16>, vector<128x128xbf16>, vector<8x128xf32> -> vector<8x128xf32>
    %c0_52 = arith.constant 0 : index
    %c0_53 = arith.constant 0 : index
    %c0_54 = arith.constant 0 : index
    %92 = vector.load %arg12[%c0_52, %c0_53, %c0_54] : memref<2x1x128xf32, #tpu.memory_space<vmem>>, vector<1x1x128xf32>
    %93 = vector.shape_cast %92 : vector<1x1x128xf32> to vector<1x128xf32>
    %94 = vector.broadcast %93 : vector<1x128xf32> to vector<8x128xf32>
    %95 = arith.addf %91, %94 : vector<8x128xf32>
    %cst_55 = arith.constant 0.000000e+00 : f32
    %96 = vector.broadcast %cst_55 : f32 to vector<8x128xf32>
    %97 = arith.maximumf %95, %96 : vector<8x128xf32>
    %c1_56 = arith.constant 1 : index
    %c0_57 = arith.constant 0 : index
    %c0_58 = arith.constant 0 : index
    %98 = vector.load %arg11[%c1_56, %c0_57, %c0_58] : memref<2x128x128xbf16, #tpu.memory_space<vmem>>, vector<1x128x128xbf16>
    %99 = vector.shape_cast %98 : vector<1x128x128xbf16> to vector<128x128xbf16>
    %100 = arith.truncf %97 : vector<8x128xf32> to vector<8x128xbf16>
    %cst_59 = arith.constant dense<0.000000e+00> : vector<8x128xf32>
    %101 = tpu.matmul %100, %99, %cst_59 {dimension_numbers = #tpu.dot_dimension_numbers<[1], [0], [0], [1], [0, 0, 1, 1], [], []>} : vector<8x128xbf16>, vector<128x128xbf16>, vector<8x128xf32> -> vector<8x128xf32>
    %c1_60 = arith.constant 1 : index
    %c0_61 = arith.constant 0 : index
    %c0_62 = arith.constant 0 : index
    %102 = vector.load %arg12[%c1_60, %c0_61, %c0_62] : memref<2x1x128xf32, #tpu.memory_space<vmem>>, vector<1x1x128xf32>
    %103 = vector.shape_cast %102 : vector<1x1x128xf32> to vector<1x128xf32>
    %104 = vector.broadcast %103 : vector<1x128xf32> to vector<8x128xf32>
    %105 = arith.addf %101, %104 : vector<8x128xf32>
    %cst_63 = arith.constant 0.000000e+00 : f32
    %106 = vector.broadcast %cst_63 : f32 to vector<8x128xf32>
    %107 = arith.maximumf %105, %106 : vector<8x128xf32>
    %c0_64 = arith.constant 0 : index
    %c0_65 = arith.constant 0 : index
    %108 = vector.load %arg7[%c0_64, %c0_65] : memref<128x128xbf16, #tpu.memory_space<vmem>>, vector<128x128xbf16>
    %109 = arith.truncf %65 : vector<8x128xf32> to vector<8x128xbf16>
    %cst_66 = arith.constant dense<0.000000e+00> : vector<8x128xf32>
    %110 = tpu.matmul %109, %108, %cst_66 {dimension_numbers = #tpu.dot_dimension_numbers<[1], [0], [0], [1], [0, 0, 1, 1], [], []>} : vector<8x128xbf16>, vector<128x128xbf16>, vector<8x128xf32> -> vector<8x128xf32>
    %c0_67 = arith.constant 0 : index
    %c0_68 = arith.constant 0 : index
    %111 = vector.load %arg10[%c0_67, %c0_68] : memref<128x128xbf16, #tpu.memory_space<vmem>>, vector<128x128xbf16>
    %112 = arith.truncf %87 : vector<8x128xf32> to vector<8x128xbf16>
    %cst_69 = arith.constant dense<0.000000e+00> : vector<8x128xf32>
    %113 = tpu.matmul %112, %111, %cst_69 {dimension_numbers = #tpu.dot_dimension_numbers<[1], [0], [0], [1], [0, 0, 1, 1], [], []>} : vector<8x128xbf16>, vector<128x128xbf16>, vector<8x128xf32> -> vector<8x128xf32>
    %c0_70 = arith.constant 0 : index
    %c0_71 = arith.constant 0 : index
    %114 = vector.load %arg13[%c0_70, %c0_71] : memref<128x128xbf16, #tpu.memory_space<vmem>>, vector<128x128xbf16>
    %115 = arith.truncf %107 : vector<8x128xf32> to vector<8x128xbf16>
    %cst_72 = arith.constant dense<0.000000e+00> : vector<8x128xf32>
    %116 = tpu.matmul %115, %114, %cst_72 {dimension_numbers = #tpu.dot_dimension_numbers<[1], [0], [0], [1], [0, 0, 1, 1], [], []>} : vector<8x128xbf16>, vector<128x128xbf16>, vector<8x128xf32> -> vector<8x128xf32>
    %117 = arith.mulf %116, %0 : vector<8x128xf32>
    %118 = arith.addf %113, %117 : vector<8x128xf32>
    %119 = arith.mulf %110, %118 : vector<8x128xf32>
    %c0_73 = arith.constant 0 : index
    %c0_74 = arith.constant 0 : index
    %120 = vector.load %arg2[%c0_73, %c0_74] : memref<8x128xf32, #tpu.memory_space<vmem>>, vector<8x128xf32>
    %121 = arith.addf %119, %120 : vector<8x128xf32>
    %c0_75 = arith.constant 0 : index
    %c0_76 = arith.constant 0 : index
    %122 = vector.load %arg14[%c0_75, %c0_76] : memref<8x128xf32, #tpu.memory_space<vmem>>, vector<8x128xf32>
    tpu.vector_store %arg14[%c0_75, %c0_76], %121 {strides = array<i32>} : memref<8x128xf32, #tpu.memory_space<vmem>>, vector<8x128xf32>,
    return
  }
  func.func @transform_0(%arg0: i32) -> (i32, i32) {
    %c0_i32 = arith.constant 0 : i32
    %c0_i32_0 = arith.constant 0 : i32
    return %arg0, %c0_i32 : i32, i32
  }
  func.func @transform_1(%arg0: i32) -> (i32, i32) {
    %c0_i32 = arith.constant 0 : i32
    %c0_i32_0 = arith.constant 0 : i32
    return %arg0, %c0_i32 : i32, i32
  }
  func.func @transform_2(%arg0: i32) -> (i32, i32) {
    %c0_i32 = arith.constant 0 : i32
    %c0_i32_0 = arith.constant 0 : i32
    %c0_i32_1 = arith.constant 0 : i32
    return %c0_i32, %c0_i32_0 : i32, i32
  }
  func.func @transform_3(%arg0: i32) -> (i32, i32) {
    %c0_i32 = arith.constant 0 : i32
    %c0_i32_0 = arith.constant 0 : i32
    %c0_i32_1 = arith.constant 0 : i32
    return %c0_i32, %c0_i32_0 : i32, i32
  }
  func.func @transform_4(%arg0: i32) -> (i32, i32, i32) {
    %c0_i32 = arith.constant 0 : i32
    %c0_i32_0 = arith.constant 0 : i32
    %c0_i32_1 = arith.constant 0 : i32
    %c0_i32_2 = arith.constant 0 : i32
    return %c0_i32, %c0_i32_0, %c0_i32_1 : i32, i32, i32
  }
  func.func @transform_5(%arg0: i32) -> (i32, i32, i32) {
    %c0_i32 = arith.constant 0 : i32
    %c0_i32_0 = arith.constant 0 : i32
    %c0_i32_1 = arith.constant 0 : i32
    %c0_i32_2 = arith.constant 0 : i32
    return %c0_i32, %c0_i32_0, %c0_i32_1 : i32, i32, i32
  }
  func.func @transform_6(%arg0: i32) -> (i32, i32) {
    %c0_i32 = arith.constant 0 : i32
    %c0_i32_0 = arith.constant 0 : i32
    %c0_i32_1 = arith.constant 0 : i32
    return %c0_i32, %c0_i32_0 : i32, i32
  }
  func.func @transform_7(%arg0: i32) -> (i32, i32, i32) {
    %c0_i32 = arith.constant 0 : i32
    %c0_i32_0 = arith.constant 0 : i32
    %c0_i32_1 = arith.constant 0 : i32
    %c0_i32_2 = arith.constant 0 : i32
    return %c0_i32, %c0_i32_0, %c0_i32_1 : i32, i32, i32
  }
  func.func @transform_8(%arg0: i32) -> (i32, i32, i32) {
    %c0_i32 = arith.constant 0 : i32
    %c0_i32_0 = arith.constant 0 : i32
    %c0_i32_1 = arith.constant 0 : i32
    %c0_i32_2 = arith.constant 0 : i32
    return %c0_i32, %c0_i32_0, %c0_i32_1 : i32, i32, i32
  }
  func.func @transform_9(%arg0: i32) -> (i32, i32) {
    %c0_i32 = arith.constant 0 : i32
    %c0_i32_0 = arith.constant 0 : i32
    %c0_i32_1 = arith.constant 0 : i32
    return %c0_i32, %c0_i32_0 : i32, i32
  }
  func.func @transform_10(%arg0: i32) -> (i32, i32, i32) {
    %c0_i32 = arith.constant 0 : i32
    %c0_i32_0 = arith.constant 0 : i32
    %c0_i32_1 = arith.constant 0 : i32
    %c0_i32_2 = arith.constant 0 : i32
    return %c0_i32, %c0_i32_0, %c0_i32_1 : i32, i32, i32
  }
  func.func @transform_11(%arg0: i32) -> (i32, i32, i32) {
    %c0_i32 = arith.constant 0 : i32
    %c0_i32_0 = arith.constant 0 : i32
    %c0_i32_1 = arith.constant 0 : i32
    %c0_i32_2 = arith.constant 0 : i32
    return %c0_i32, %c0_i32_0, %c0_i32_1 : i32, i32, i32
  }
  func.func @transform_12(%arg0: i32) -> (i32, i32) {
    %c0_i32 = arith.constant 0 : i32
    %c0_i32_0 = arith.constant 0 : i32
    %c0_i32_1 = arith.constant 0 : i32
    return %c0_i32, %c0_i32_0 : i32, i32
  }
  func.func @transform_13(%arg0: i32) -> (i32, i32) {
    %c0_i32 = arith.constant 0 : i32
    %c0_i32_0 = arith.constant 0 : i32
    return %arg0, %c0_i32 : i32, i32
  }
}

module attributes {stable_mosaic.version = 11 : i64} {
  func.func @_message_kernel(%arg0: i32, %arg1: memref<16x128xf32, #tpu.memory_space<vmem>>, %arg2: memref<128x128xbf16, #tpu.memory_space<vmem>>, %arg3: memref<1x128xf32, #tpu.memory_space<vmem>>, %arg4: memref<2x128x128xbf16, #tpu.memory_space<vmem>>, %arg5: memref<2x1x128xf32, #tpu.memory_space<vmem>>, %arg6: memref<128x128xbf16, #tpu.memory_space<vmem>>, %arg7: memref<16x128xf32, #tpu.memory_space<vmem>>) attributes {dimension_semantics = [#tpu.dimension_semantics<parallel>], iteration_bounds = array<i64: 1>, scalar_prefetch = 0 : i64, scratch_operands = 0 : i64, tpu.core_type = #tpu.core_type<tc>, window_params = [{transform_indices = @transform_0, window_bounds = array<i64: 16, 128>}, {pipeline_mode = #tpu.pipeline_mode<synchronous>, transform_indices = @transform_1, window_bounds = array<i64: 128, 128>}, {pipeline_mode = #tpu.pipeline_mode<synchronous>, transform_indices = @transform_2, window_bounds = array<i64: 1, 128>}, {pipeline_mode = #tpu.pipeline_mode<synchronous>, transform_indices = @transform_3, window_bounds = array<i64: 2, 128, 128>}, {pipeline_mode = #tpu.pipeline_mode<synchronous>, transform_indices = @transform_4, window_bounds = array<i64: 2, 1, 128>}, {pipeline_mode = #tpu.pipeline_mode<synchronous>, transform_indices = @transform_5, window_bounds = array<i64: 128, 128>}, {transform_indices = @transform_6, window_bounds = array<i64: 16, 128>}]} {
    %c0 = arith.constant 0 : index
    %c0_0 = arith.constant 0 : index
    %0 = vector.load %arg1[%c0, %c0_0] : memref<16x128xf32, #tpu.memory_space<vmem>>, vector<16x128xf32>
    %c0_1 = arith.constant 0 : index
    %c0_2 = arith.constant 0 : index
    %1 = vector.load %arg2[%c0_1, %c0_2] : memref<128x128xbf16, #tpu.memory_space<vmem>>, vector<128x128xbf16>
    %2 = arith.truncf %0 : vector<16x128xf32> to vector<16x128xbf16>
    %cst = arith.constant dense<0.000000e+00> : vector<16x128xf32>
    %3 = tpu.matmul %2, %1, %cst {dimension_numbers = #tpu.dot_dimension_numbers<[1], [0], [0], [1], [0, 0, 1, 1], [], []>} : vector<16x128xbf16>, vector<128x128xbf16>, vector<16x128xf32> -> vector<16x128xf32>
    %c0_3 = arith.constant 0 : index
    %c0_4 = arith.constant 0 : index
    %4 = vector.load %arg3[%c0_3, %c0_4] : memref<1x128xf32, #tpu.memory_space<vmem>>, vector<1x128xf32>
    %5 = vector.broadcast %4 : vector<1x128xf32> to vector<16x128xf32>
    %6 = arith.addf %3, %5 : vector<16x128xf32>
    %cst_5 = arith.constant 0.000000e+00 : f32
    %7 = vector.broadcast %cst_5 : f32 to vector<16x128xf32>
    %8 = arith.maximumf %6, %7 : vector<16x128xf32>
    %c0_6 = arith.constant 0 : index
    %c0_7 = arith.constant 0 : index
    %c0_8 = arith.constant 0 : index
    %9 = vector.load %arg4[%c0_6, %c0_7, %c0_8] : memref<2x128x128xbf16, #tpu.memory_space<vmem>>, vector<1x128x128xbf16>
    %10 = vector.shape_cast %9 : vector<1x128x128xbf16> to vector<128x128xbf16>
    %11 = arith.truncf %8 : vector<16x128xf32> to vector<16x128xbf16>
    %cst_9 = arith.constant dense<0.000000e+00> : vector<16x128xf32>
    %12 = tpu.matmul %11, %10, %cst_9 {dimension_numbers = #tpu.dot_dimension_numbers<[1], [0], [0], [1], [0, 0, 1, 1], [], []>} : vector<16x128xbf16>, vector<128x128xbf16>, vector<16x128xf32> -> vector<16x128xf32>
    %c0_10 = arith.constant 0 : index
    %c0_11 = arith.constant 0 : index
    %c0_12 = arith.constant 0 : index
    %13 = vector.load %arg5[%c0_10, %c0_11, %c0_12] : memref<2x1x128xf32, #tpu.memory_space<vmem>>, vector<1x1x128xf32>
    %14 = vector.shape_cast %13 : vector<1x1x128xf32> to vector<1x128xf32>
    %15 = vector.broadcast %14 : vector<1x128xf32> to vector<16x128xf32>
    %16 = arith.addf %12, %15 : vector<16x128xf32>
    %cst_13 = arith.constant 0.000000e+00 : f32
    %17 = vector.broadcast %cst_13 : f32 to vector<16x128xf32>
    %18 = arith.maximumf %16, %17 : vector<16x128xf32>
    %19 = arith.addf %8, %18 : vector<16x128xf32>
    %c1 = arith.constant 1 : index
    %c0_14 = arith.constant 0 : index
    %c0_15 = arith.constant 0 : index
    %20 = vector.load %arg4[%c1, %c0_14, %c0_15] : memref<2x128x128xbf16, #tpu.memory_space<vmem>>, vector<1x128x128xbf16>
    %21 = vector.shape_cast %20 : vector<1x128x128xbf16> to vector<128x128xbf16>
    %22 = arith.truncf %19 : vector<16x128xf32> to vector<16x128xbf16>
    %cst_16 = arith.constant dense<0.000000e+00> : vector<16x128xf32>
    %23 = tpu.matmul %22, %21, %cst_16 {dimension_numbers = #tpu.dot_dimension_numbers<[1], [0], [0], [1], [0, 0, 1, 1], [], []>} : vector<16x128xbf16>, vector<128x128xbf16>, vector<16x128xf32> -> vector<16x128xf32>
    %c1_17 = arith.constant 1 : index
    %c0_18 = arith.constant 0 : index
    %c0_19 = arith.constant 0 : index
    %24 = vector.load %arg5[%c1_17, %c0_18, %c0_19] : memref<2x1x128xf32, #tpu.memory_space<vmem>>, vector<1x1x128xf32>
    %25 = vector.shape_cast %24 : vector<1x1x128xf32> to vector<1x128xf32>
    %26 = vector.broadcast %25 : vector<1x128xf32> to vector<16x128xf32>
    %27 = arith.addf %23, %26 : vector<16x128xf32>
    %cst_20 = arith.constant 0.000000e+00 : f32
    %28 = vector.broadcast %cst_20 : f32 to vector<16x128xf32>
    %29 = arith.maximumf %27, %28 : vector<16x128xf32>
    %30 = arith.addf %19, %29 : vector<16x128xf32>
    %c0_21 = arith.constant 0 : index
    %c0_22 = arith.constant 0 : index
    %31 = vector.load %arg6[%c0_21, %c0_22] : memref<128x128xbf16, #tpu.memory_space<vmem>>, vector<128x128xbf16>
    %32 = arith.truncf %30 : vector<16x128xf32> to vector<16x128xbf16>
    %cst_23 = arith.constant dense<0.000000e+00> : vector<16x128xf32>
    %33 = tpu.matmul %32, %31, %cst_23 {dimension_numbers = #tpu.dot_dimension_numbers<[1], [0], [0], [1], [0, 0, 1, 1], [], []>} : vector<16x128xbf16>, vector<128x128xbf16>, vector<16x128xf32> -> vector<16x128xf32>
    %c16_i32 = arith.constant 16 : i32
    %34 = arith.muli %arg0, %c16_i32 : i32
    %35 = tpu.iota {dimensions = array<i32: 0>} : vector<16x128xi32>
    %36 = vector.broadcast %34 : i32 to vector<16x128xi32>
    %37 = arith.addi %36, %35 : vector<16x128xi32>
    %c16_i32_24 = arith.constant 16 : i32
    %38 = vector.broadcast %c16_i32_24 : i32 to vector<16x128xi32>
    %39 = arith.cmpi slt, %37, %38 : vector<16x128xi32>
    %cst_25 = arith.constant 0.000000e+00 : f32
    %40 = vector.broadcast %cst_25 : f32 to vector<16x128xf32>
    %41 = arith.select %39, %33, %40 : vector<16x128xi1>, vector<16x128xf32>
    %c0_26 = arith.constant 0 : index
    %c0_27 = arith.constant 0 : index
    %42 = vector.load %arg7[%c0_26, %c0_27] : memref<16x128xf32, #tpu.memory_space<vmem>>, vector<16x128xf32>
    tpu.vector_store %arg7[%c0_26, %c0_27], %41 {strides = array<i32>} : memref<16x128xf32, #tpu.memory_space<vmem>>, vector<16x128xf32>,
    return
  }
  func.func @transform_0(%arg0: i32) -> (i32, i32) {
    %c0_i32 = arith.constant 0 : i32
    %c0_i32_0 = arith.constant 0 : i32
    return %arg0, %c0_i32 : i32, i32
  }
  func.func @transform_1(%arg0: i32) -> (i32, i32) {
    %c0_i32 = arith.constant 0 : i32
    %c0_i32_0 = arith.constant 0 : i32
    %c0_i32_1 = arith.constant 0 : i32
    return %c0_i32, %c0_i32_0 : i32, i32
  }
  func.func @transform_2(%arg0: i32) -> (i32, i32) {
    %c0_i32 = arith.constant 0 : i32
    %c0_i32_0 = arith.constant 0 : i32
    %c0_i32_1 = arith.constant 0 : i32
    return %c0_i32, %c0_i32_0 : i32, i32
  }
  func.func @transform_3(%arg0: i32) -> (i32, i32, i32) {
    %c0_i32 = arith.constant 0 : i32
    %c0_i32_0 = arith.constant 0 : i32
    %c0_i32_1 = arith.constant 0 : i32
    %c0_i32_2 = arith.constant 0 : i32
    return %c0_i32, %c0_i32_0, %c0_i32_1 : i32, i32, i32
  }
  func.func @transform_4(%arg0: i32) -> (i32, i32, i32) {
    %c0_i32 = arith.constant 0 : i32
    %c0_i32_0 = arith.constant 0 : i32
    %c0_i32_1 = arith.constant 0 : i32
    %c0_i32_2 = arith.constant 0 : i32
    return %c0_i32, %c0_i32_0, %c0_i32_1 : i32, i32, i32
  }
  func.func @transform_5(%arg0: i32) -> (i32, i32) {
    %c0_i32 = arith.constant 0 : i32
    %c0_i32_0 = arith.constant 0 : i32
    %c0_i32_1 = arith.constant 0 : i32
    return %c0_i32, %c0_i32_0 : i32, i32
  }
  func.func @transform_6(%arg0: i32) -> (i32, i32) {
    %c0_i32 = arith.constant 0 : i32
    %c0_i32_0 = arith.constant 0 : i32
    return %arg0, %c0_i32 : i32, i32
  }
}

module attributes {stable_mosaic.version = 11 : i64} {
  func.func @_update_kernel(%arg0: i32, %arg1: memref<8x128xf32, #tpu.memory_space<vmem>>, %arg2: memref<8x128xf32, #tpu.memory_space<vmem>>, %arg3: memref<128x384xbf16, #tpu.memory_space<vmem>>, %arg4: memref<1x384xf32, #tpu.memory_space<vmem>>, %arg5: memref<2x128x128xbf16, #tpu.memory_space<vmem>>, %arg6: memref<2x1x128xf32, #tpu.memory_space<vmem>>, %arg7: memref<128x128xbf16, #tpu.memory_space<vmem>>, %arg8: memref<2x128x128xbf16, #tpu.memory_space<vmem>>, %arg9: memref<2x1x128xf32, #tpu.memory_space<vmem>>, %arg10: memref<128x128xbf16, #tpu.memory_space<vmem>>, %arg11: memref<2x128x128xbf16, #tpu.memory_space<vmem>>, %arg12: memref<2x1x128xf32, #tpu.memory_space<vmem>>, %arg13: memref<128x128xbf16, #tpu.memory_space<vmem>>, %arg14: memref<8x128xf32, #tpu.memory_space<vmem>>) attributes {dimension_semantics = [#tpu.dimension_semantics<parallel>], iteration_bounds = array<i64: 1>, scalar_prefetch = 0 : i64, scratch_operands = 0 : i64, tpu.core_type = #tpu.core_type<tc>, window_params = [{transform_indices = @transform_0, window_bounds = array<i64: 8, 128>}, {transform_indices = @transform_1, window_bounds = array<i64: 8, 128>}, {pipeline_mode = #tpu.pipeline_mode<synchronous>, transform_indices = @transform_2, window_bounds = array<i64: 128, 384>}, {pipeline_mode = #tpu.pipeline_mode<synchronous>, transform_indices = @transform_3, window_bounds = array<i64: 1, 384>}, {pipeline_mode = #tpu.pipeline_mode<synchronous>, transform_indices = @transform_4, window_bounds = array<i64: 2, 128, 128>}, {pipeline_mode = #tpu.pipeline_mode<synchronous>, transform_indices = @transform_5, window_bounds = array<i64: 2, 1, 128>}, {pipeline_mode = #tpu.pipeline_mode<synchronous>, transform_indices = @transform_6, window_bounds = array<i64: 128, 128>}, {pipeline_mode = #tpu.pipeline_mode<synchronous>, transform_indices = @transform_7, window_bounds = array<i64: 2, 128, 128>}, {pipeline_mode = #tpu.pipeline_mode<synchronous>, transform_indices = @transform_8, window_bounds = array<i64: 2, 1, 128>}, {pipeline_mode = #tpu.pipeline_mode<synchronous>, transform_indices = @transform_9, window_bounds = array<i64: 128, 128>}, {pipeline_mode = #tpu.pipeline_mode<synchronous>, transform_indices = @transform_10, window_bounds = array<i64: 2, 128, 128>}, {pipeline_mode = #tpu.pipeline_mode<synchronous>, transform_indices = @transform_11, window_bounds = array<i64: 2, 1, 128>}, {pipeline_mode = #tpu.pipeline_mode<synchronous>, transform_indices = @transform_12, window_bounds = array<i64: 128, 128>}, {transform_indices = @transform_13, window_bounds = array<i64: 8, 128>}]} {
    %c0 = arith.constant 0 : index
    %c0_0 = arith.constant 0 : index
    %0 = vector.load %arg1[%c0, %c0_0] : memref<8x128xf32, #tpu.memory_space<vmem>>, vector<8x128xf32>
    %c0_1 = arith.constant 0 : index
    %c0_2 = arith.constant 0 : index
    %1 = vector.load %arg3[%c0_1, %c0_2] : memref<128x384xbf16, #tpu.memory_space<vmem>>, vector<128x384xbf16>
    %2 = arith.truncf %0 : vector<8x128xf32> to vector<8x128xbf16>
    %cst = arith.constant dense<0.000000e+00> : vector<8x384xf32>
    %3 = tpu.matmul %2, %1, %cst {dimension_numbers = #tpu.dot_dimension_numbers<[1], [0], [0], [1], [0, 0, 1, 1], [], []>} : vector<8x128xbf16>, vector<128x384xbf16>, vector<8x384xf32> -> vector<8x384xf32>
    %c0_3 = arith.constant 0 : index
    %c0_4 = arith.constant 0 : index
    %4 = vector.load %arg4[%c0_3, %c0_4] : memref<1x384xf32, #tpu.memory_space<vmem>>, vector<1x384xf32>
    %5 = vector.broadcast %4 : vector<1x384xf32> to vector<8x384xf32>
    %6 = arith.addf %3, %5 : vector<8x384xf32>
    %7 = vector.extract_strided_slice %6 {offsets = [0, 0], sizes = [8, 128], strides = [1, 1]} : vector<8x384xf32> to vector<8x128xf32>
    %8 = math.absf %7 : vector<8x128xf32>
    %cst_5 = arith.constant 0.000000e+00 : f32
    %9 = vector.broadcast %cst_5 : f32 to vector<8x128xf32>
    %10 = arith.subf %9, %8 : vector<8x128xf32>
    %11 = math.exp %10 : vector<8x128xf32>
    %cst_6 = arith.constant 1.000000e+00 : f32
    %12 = vector.broadcast %cst_6 : f32 to vector<8x128xf32>
    %13 = arith.addf %12, %11 : vector<8x128xf32>
    %cst_7 = arith.constant 1.000000e+00 : f32
    %14 = vector.broadcast %cst_7 : f32 to vector<8x128xf32>
    %15 = arith.divf %14, %13 : vector<8x128xf32>
    %cst_8 = arith.constant 0.000000e+00 : f32
    %16 = vector.broadcast %cst_8 : f32 to vector<8x128xf32>
    %17 = arith.cmpf oge, %7, %16 : vector<8x128xf32>
    %18 = arith.mulf %11, %15 : vector<8x128xf32>
    %19 = arith.select %17, %15, %18 : vector<8x128xi1>, vector<8x128xf32>
    %20 = vector.extract_strided_slice %6 {offsets = [0, 128], sizes = [8, 128], strides = [1, 1]} : vector<8x384xf32> to vector<8x128xf32>
    %cst_9 = arith.constant 0.000000e+00 : f32
    %21 = vector.broadcast %cst_9 : f32 to vector<8x128xf32>
    %22 = arith.maximumf %20, %21 : vector<8x128xf32>
    %23 = vector.extract_strided_slice %6 {offsets = [0, 256], sizes = [8, 128], strides = [1, 1]} : vector<8x384xf32> to vector<8x128xf32>
    %cst_10 = arith.constant 0.000000e+00 : f32
    %24 = vector.broadcast %cst_10 : f32 to vector<8x128xf32>
    %25 = arith.maximumf %23, %24 : vector<8x128xf32>
    %c0_11 = arith.constant 0 : index
    %c0_12 = arith.constant 0 : index
    %c0_13 = arith.constant 0 : index
    %26 = vector.load %arg5[%c0_11, %c0_12, %c0_13] : memref<2x128x128xbf16, #tpu.memory_space<vmem>>, vector<1x128x128xbf16>
    %27 = vector.shape_cast %26 : vector<1x128x128xbf16> to vector<128x128xbf16>
    %28 = arith.truncf %19 : vector<8x128xf32> to vector<8x128xbf16>
    %cst_14 = arith.constant dense<0.000000e+00> : vector<8x128xf32>
    %29 = tpu.matmul %28, %27, %cst_14 {dimension_numbers = #tpu.dot_dimension_numbers<[1], [0], [0], [1], [0, 0, 1, 1], [], []>} : vector<8x128xbf16>, vector<128x128xbf16>, vector<8x128xf32> -> vector<8x128xf32>
    %c0_15 = arith.constant 0 : index
    %c0_16 = arith.constant 0 : index
    %c0_17 = arith.constant 0 : index
    %30 = vector.load %arg6[%c0_15, %c0_16, %c0_17] : memref<2x1x128xf32, #tpu.memory_space<vmem>>, vector<1x1x128xf32>
    %31 = vector.shape_cast %30 : vector<1x1x128xf32> to vector<1x128xf32>
    %32 = vector.broadcast %31 : vector<1x128xf32> to vector<8x128xf32>
    %33 = arith.addf %29, %32 : vector<8x128xf32>
    %34 = math.absf %33 : vector<8x128xf32>
    %cst_18 = arith.constant 0.000000e+00 : f32
    %35 = vector.broadcast %cst_18 : f32 to vector<8x128xf32>
    %36 = arith.subf %35, %34 : vector<8x128xf32>
    %37 = math.exp %36 : vector<8x128xf32>
    %cst_19 = arith.constant 1.000000e+00 : f32
    %38 = vector.broadcast %cst_19 : f32 to vector<8x128xf32>
    %39 = arith.addf %38, %37 : vector<8x128xf32>
    %cst_20 = arith.constant 1.000000e+00 : f32
    %40 = vector.broadcast %cst_20 : f32 to vector<8x128xf32>
    %41 = arith.divf %40, %39 : vector<8x128xf32>
    %cst_21 = arith.constant 0.000000e+00 : f32
    %42 = vector.broadcast %cst_21 : f32 to vector<8x128xf32>
    %43 = arith.cmpf oge, %33, %42 : vector<8x128xf32>
    %44 = arith.mulf %37, %41 : vector<8x128xf32>
    %45 = arith.select %43, %41, %44 : vector<8x128xi1>, vector<8x128xf32>
    %c1 = arith.constant 1 : index
    %c0_22 = arith.constant 0 : index
    %c0_23 = arith.constant 0 : index
    %46 = vector.load %arg5[%c1, %c0_22, %c0_23] : memref<2x128x128xbf16, #tpu.memory_space<vmem>>, vector<1x128x128xbf16>
    %47 = vector.shape_cast %46 : vector<1x128x128xbf16> to vector<128x128xbf16>
    %48 = arith.truncf %45 : vector<8x128xf32> to vector<8x128xbf16>
    %cst_24 = arith.constant dense<0.000000e+00> : vector<8x128xf32>
    %49 = tpu.matmul %48, %47, %cst_24 {dimension_numbers = #tpu.dot_dimension_numbers<[1], [0], [0], [1], [0, 0, 1, 1], [], []>} : vector<8x128xbf16>, vector<128x128xbf16>, vector<8x128xf32> -> vector<8x128xf32>
    %c1_25 = arith.constant 1 : index
    %c0_26 = arith.constant 0 : index
    %c0_27 = arith.constant 0 : index
    %50 = vector.load %arg6[%c1_25, %c0_26, %c0_27] : memref<2x1x128xf32, #tpu.memory_space<vmem>>, vector<1x1x128xf32>
    %51 = vector.shape_cast %50 : vector<1x1x128xf32> to vector<1x128xf32>
    %52 = vector.broadcast %51 : vector<1x128xf32> to vector<8x128xf32>
    %53 = arith.addf %49, %52 : vector<8x128xf32>
    %54 = math.absf %53 : vector<8x128xf32>
    %cst_28 = arith.constant 0.000000e+00 : f32
    %55 = vector.broadcast %cst_28 : f32 to vector<8x128xf32>
    %56 = arith.subf %55, %54 : vector<8x128xf32>
    %57 = math.exp %56 : vector<8x128xf32>
    %cst_29 = arith.constant 1.000000e+00 : f32
    %58 = vector.broadcast %cst_29 : f32 to vector<8x128xf32>
    %59 = arith.addf %58, %57 : vector<8x128xf32>
    %cst_30 = arith.constant 1.000000e+00 : f32
    %60 = vector.broadcast %cst_30 : f32 to vector<8x128xf32>
    %61 = arith.divf %60, %59 : vector<8x128xf32>
    %cst_31 = arith.constant 0.000000e+00 : f32
    %62 = vector.broadcast %cst_31 : f32 to vector<8x128xf32>
    %63 = arith.cmpf oge, %53, %62 : vector<8x128xf32>
    %64 = arith.mulf %57, %61 : vector<8x128xf32>
    %65 = arith.select %63, %61, %64 : vector<8x128xi1>, vector<8x128xf32>
    %c0_32 = arith.constant 0 : index
    %c0_33 = arith.constant 0 : index
    %c0_34 = arith.constant 0 : index
    %66 = vector.load %arg8[%c0_32, %c0_33, %c0_34] : memref<2x128x128xbf16, #tpu.memory_space<vmem>>, vector<1x128x128xbf16>
    %67 = vector.shape_cast %66 : vector<1x128x128xbf16> to vector<128x128xbf16>
    %68 = arith.truncf %22 : vector<8x128xf32> to vector<8x128xbf16>
    %cst_35 = arith.constant dense<0.000000e+00> : vector<8x128xf32>
    %69 = tpu.matmul %68, %67, %cst_35 {dimension_numbers = #tpu.dot_dimension_numbers<[1], [0], [0], [1], [0, 0, 1, 1], [], []>} : vector<8x128xbf16>, vector<128x128xbf16>, vector<8x128xf32> -> vector<8x128xf32>
    %c0_36 = arith.constant 0 : index
    %c0_37 = arith.constant 0 : index
    %c0_38 = arith.constant 0 : index
    %70 = vector.load %arg9[%c0_36, %c0_37, %c0_38] : memref<2x1x128xf32, #tpu.memory_space<vmem>>, vector<1x1x128xf32>
    %71 = vector.shape_cast %70 : vector<1x1x128xf32> to vector<1x128xf32>
    %72 = vector.broadcast %71 : vector<1x128xf32> to vector<8x128xf32>
    %73 = arith.addf %69, %72 : vector<8x128xf32>
    %cst_39 = arith.constant 0.000000e+00 : f32
    %74 = vector.broadcast %cst_39 : f32 to vector<8x128xf32>
    %75 = arith.maximumf %73, %74 : vector<8x128xf32>
    %76 = arith.addf %22, %75 : vector<8x128xf32>
    %c1_40 = arith.constant 1 : index
    %c0_41 = arith.constant 0 : index
    %c0_42 = arith.constant 0 : index
    %77 = vector.load %arg8[%c1_40, %c0_41, %c0_42] : memref<2x128x128xbf16, #tpu.memory_space<vmem>>, vector<1x128x128xbf16>
    %78 = vector.shape_cast %77 : vector<1x128x128xbf16> to vector<128x128xbf16>
    %79 = arith.truncf %76 : vector<8x128xf32> to vector<8x128xbf16>
    %cst_43 = arith.constant dense<0.000000e+00> : vector<8x128xf32>
    %80 = tpu.matmul %79, %78, %cst_43 {dimension_numbers = #tpu.dot_dimension_numbers<[1], [0], [0], [1], [0, 0, 1, 1], [], []>} : vector<8x128xbf16>, vector<128x128xbf16>, vector<8x128xf32> -> vector<8x128xf32>
    %c1_44 = arith.constant 1 : index
    %c0_45 = arith.constant 0 : index
    %c0_46 = arith.constant 0 : index
    %81 = vector.load %arg9[%c1_44, %c0_45, %c0_46] : memref<2x1x128xf32, #tpu.memory_space<vmem>>, vector<1x1x128xf32>
    %82 = vector.shape_cast %81 : vector<1x1x128xf32> to vector<1x128xf32>
    %83 = vector.broadcast %82 : vector<1x128xf32> to vector<8x128xf32>
    %84 = arith.addf %80, %83 : vector<8x128xf32>
    %cst_47 = arith.constant 0.000000e+00 : f32
    %85 = vector.broadcast %cst_47 : f32 to vector<8x128xf32>
    %86 = arith.maximumf %84, %85 : vector<8x128xf32>
    %87 = arith.addf %76, %86 : vector<8x128xf32>
    %c0_48 = arith.constant 0 : index
    %c0_49 = arith.constant 0 : index
    %c0_50 = arith.constant 0 : index
    %88 = vector.load %arg11[%c0_48, %c0_49, %c0_50] : memref<2x128x128xbf16, #tpu.memory_space<vmem>>, vector<1x128x128xbf16>
    %89 = vector.shape_cast %88 : vector<1x128x128xbf16> to vector<128x128xbf16>
    %90 = arith.truncf %25 : vector<8x128xf32> to vector<8x128xbf16>
    %cst_51 = arith.constant dense<0.000000e+00> : vector<8x128xf32>
    %91 = tpu.matmul %90, %89, %cst_51 {dimension_numbers = #tpu.dot_dimension_numbers<[1], [0], [0], [1], [0, 0, 1, 1], [], []>} : vector<8x128xbf16>, vector<128x128xbf16>, vector<8x128xf32> -> vector<8x128xf32>
    %c0_52 = arith.constant 0 : index
    %c0_53 = arith.constant 0 : index
    %c0_54 = arith.constant 0 : index
    %92 = vector.load %arg12[%c0_52, %c0_53, %c0_54] : memref<2x1x128xf32, #tpu.memory_space<vmem>>, vector<1x1x128xf32>
    %93 = vector.shape_cast %92 : vector<1x1x128xf32> to vector<1x128xf32>
    %94 = vector.broadcast %93 : vector<1x128xf32> to vector<8x128xf32>
    %95 = arith.addf %91, %94 : vector<8x128xf32>
    %cst_55 = arith.constant 0.000000e+00 : f32
    %96 = vector.broadcast %cst_55 : f32 to vector<8x128xf32>
    %97 = arith.maximumf %95, %96 : vector<8x128xf32>
    %c1_56 = arith.constant 1 : index
    %c0_57 = arith.constant 0 : index
    %c0_58 = arith.constant 0 : index
    %98 = vector.load %arg11[%c1_56, %c0_57, %c0_58] : memref<2x128x128xbf16, #tpu.memory_space<vmem>>, vector<1x128x128xbf16>
    %99 = vector.shape_cast %98 : vector<1x128x128xbf16> to vector<128x128xbf16>
    %100 = arith.truncf %97 : vector<8x128xf32> to vector<8x128xbf16>
    %cst_59 = arith.constant dense<0.000000e+00> : vector<8x128xf32>
    %101 = tpu.matmul %100, %99, %cst_59 {dimension_numbers = #tpu.dot_dimension_numbers<[1], [0], [0], [1], [0, 0, 1, 1], [], []>} : vector<8x128xbf16>, vector<128x128xbf16>, vector<8x128xf32> -> vector<8x128xf32>
    %c1_60 = arith.constant 1 : index
    %c0_61 = arith.constant 0 : index
    %c0_62 = arith.constant 0 : index
    %102 = vector.load %arg12[%c1_60, %c0_61, %c0_62] : memref<2x1x128xf32, #tpu.memory_space<vmem>>, vector<1x1x128xf32>
    %103 = vector.shape_cast %102 : vector<1x1x128xf32> to vector<1x128xf32>
    %104 = vector.broadcast %103 : vector<1x128xf32> to vector<8x128xf32>
    %105 = arith.addf %101, %104 : vector<8x128xf32>
    %cst_63 = arith.constant 0.000000e+00 : f32
    %106 = vector.broadcast %cst_63 : f32 to vector<8x128xf32>
    %107 = arith.maximumf %105, %106 : vector<8x128xf32>
    %c0_64 = arith.constant 0 : index
    %c0_65 = arith.constant 0 : index
    %108 = vector.load %arg7[%c0_64, %c0_65] : memref<128x128xbf16, #tpu.memory_space<vmem>>, vector<128x128xbf16>
    %109 = arith.truncf %65 : vector<8x128xf32> to vector<8x128xbf16>
    %cst_66 = arith.constant dense<0.000000e+00> : vector<8x128xf32>
    %110 = tpu.matmul %109, %108, %cst_66 {dimension_numbers = #tpu.dot_dimension_numbers<[1], [0], [0], [1], [0, 0, 1, 1], [], []>} : vector<8x128xbf16>, vector<128x128xbf16>, vector<8x128xf32> -> vector<8x128xf32>
    %c0_67 = arith.constant 0 : index
    %c0_68 = arith.constant 0 : index
    %111 = vector.load %arg10[%c0_67, %c0_68] : memref<128x128xbf16, #tpu.memory_space<vmem>>, vector<128x128xbf16>
    %112 = arith.truncf %87 : vector<8x128xf32> to vector<8x128xbf16>
    %cst_69 = arith.constant dense<0.000000e+00> : vector<8x128xf32>
    %113 = tpu.matmul %112, %111, %cst_69 {dimension_numbers = #tpu.dot_dimension_numbers<[1], [0], [0], [1], [0, 0, 1, 1], [], []>} : vector<8x128xbf16>, vector<128x128xbf16>, vector<8x128xf32> -> vector<8x128xf32>
    %c0_70 = arith.constant 0 : index
    %c0_71 = arith.constant 0 : index
    %114 = vector.load %arg13[%c0_70, %c0_71] : memref<128x128xbf16, #tpu.memory_space<vmem>>, vector<128x128xbf16>
    %115 = arith.truncf %107 : vector<8x128xf32> to vector<8x128xbf16>
    %cst_72 = arith.constant dense<0.000000e+00> : vector<8x128xf32>
    %116 = tpu.matmul %115, %114, %cst_72 {dimension_numbers = #tpu.dot_dimension_numbers<[1], [0], [0], [1], [0, 0, 1, 1], [], []>} : vector<8x128xbf16>, vector<128x128xbf16>, vector<8x128xf32> -> vector<8x128xf32>
    %117 = arith.mulf %116, %0 : vector<8x128xf32>
    %118 = arith.addf %113, %117 : vector<8x128xf32>
    %119 = arith.mulf %110, %118 : vector<8x128xf32>
    %c0_73 = arith.constant 0 : index
    %c0_74 = arith.constant 0 : index
    %120 = vector.load %arg2[%c0_73, %c0_74] : memref<8x128xf32, #tpu.memory_space<vmem>>, vector<8x128xf32>
    %121 = arith.addf %119, %120 : vector<8x128xf32>
    %c0_75 = arith.constant 0 : index
    %c0_76 = arith.constant 0 : index
    %122 = vector.load %arg14[%c0_75, %c0_76] : memref<8x128xf32, #tpu.memory_space<vmem>>, vector<8x128xf32>
    tpu.vector_store %arg14[%c0_75, %c0_76], %121 {strides = array<i32>} : memref<8x128xf32, #tpu.memory_space<vmem>>, vector<8x128xf32>,
    return
  }
  func.func @transform_0(%arg0: i32) -> (i32, i32) {
    %c0_i32 = arith.constant 0 : i32
    %c0_i32_0 = arith.constant 0 : i32
    return %arg0, %c0_i32 : i32, i32
  }
  func.func @transform_1(%arg0: i32) -> (i32, i32) {
    %c0_i32 = arith.constant 0 : i32
    %c0_i32_0 = arith.constant 0 : i32
    return %arg0, %c0_i32 : i32, i32
  }
  func.func @transform_2(%arg0: i32) -> (i32, i32) {
    %c0_i32 = arith.constant 0 : i32
    %c0_i32_0 = arith.constant 0 : i32
    %c0_i32_1 = arith.constant 0 : i32
    return %c0_i32, %c0_i32_0 : i32, i32
  }
  func.func @transform_3(%arg0: i32) -> (i32, i32) {
    %c0_i32 = arith.constant 0 : i32
    %c0_i32_0 = arith.constant 0 : i32
    %c0_i32_1 = arith.constant 0 : i32
    return %c0_i32, %c0_i32_0 : i32, i32
  }
  func.func @transform_4(%arg0: i32) -> (i32, i32, i32) {
    %c0_i32 = arith.constant 0 : i32
    %c0_i32_0 = arith.constant 0 : i32
    %c0_i32_1 = arith.constant 0 : i32
    %c0_i32_2 = arith.constant 0 : i32
    return %c0_i32, %c0_i32_0, %c0_i32_1 : i32, i32, i32
  }
  func.func @transform_5(%arg0: i32) -> (i32, i32, i32) {
    %c0_i32 = arith.constant 0 : i32
    %c0_i32_0 = arith.constant 0 : i32
    %c0_i32_1 = arith.constant 0 : i32
    %c0_i32_2 = arith.constant 0 : i32
    return %c0_i32, %c0_i32_0, %c0_i32_1 : i32, i32, i32
  }
  func.func @transform_6(%arg0: i32) -> (i32, i32) {
    %c0_i32 = arith.constant 0 : i32
    %c0_i32_0 = arith.constant 0 : i32
    %c0_i32_1 = arith.constant 0 : i32
    return %c0_i32, %c0_i32_0 : i32, i32
  }
  func.func @transform_7(%arg0: i32) -> (i32, i32, i32) {
    %c0_i32 = arith.constant 0 : i32
    %c0_i32_0 = arith.constant 0 : i32
    %c0_i32_1 = arith.constant 0 : i32
    %c0_i32_2 = arith.constant 0 : i32
    return %c0_i32, %c0_i32_0, %c0_i32_1 : i32, i32, i32
  }
  func.func @transform_8(%arg0: i32) -> (i32, i32, i32) {
    %c0_i32 = arith.constant 0 : i32
    %c0_i32_0 = arith.constant 0 : i32
    %c0_i32_1 = arith.constant 0 : i32
    %c0_i32_2 = arith.constant 0 : i32
    return %c0_i32, %c0_i32_0, %c0_i32_1 : i32, i32, i32
  }
  func.func @transform_9(%arg0: i32) -> (i32, i32) {
    %c0_i32 = arith.constant 0 : i32
    %c0_i32_0 = arith.constant 0 : i32
    %c0_i32_1 = arith.constant 0 : i32
    return %c0_i32, %c0_i32_0 : i32, i32
  }
  func.func @transform_10(%arg0: i32) -> (i32, i32, i32) {
    %c0_i32 = arith.constant 0 : i32
    %c0_i32_0 = arith.constant 0 : i32
    %c0_i32_1 = arith.constant 0 : i32
    %c0_i32_2 = arith.constant 0 : i32
    return %c0_i32, %c0_i32_0, %c0_i32_1 : i32, i32, i32
  }
  func.func @transform_11(%arg0: i32) -> (i32, i32, i32) {
    %c0_i32 = arith.constant 0 : i32
    %c0_i32_0 = arith.constant 0 : i32
    %c0_i32_1 = arith.constant 0 : i32
    %c0_i32_2 = arith.constant 0 : i32
    return %c0_i32, %c0_i32_0, %c0_i32_1 : i32, i32, i32
  }
  func.func @transform_12(%arg0: i32) -> (i32, i32) {
    %c0_i32 = arith.constant 0 : i32
    %c0_i32_0 = arith.constant 0 : i32
    %c0_i32_1 = arith.constant 0 : i32
    return %c0_i32, %c0_i32_0 : i32, i32
  }
  func.func @transform_13(%arg0: i32) -> (i32, i32) {
    %c0_i32 = arith.constant 0 : i32
    %c0_i32_0 = arith.constant 0 : i32
    return %arg0, %c0_i32 : i32, i32
  }
}

</mosaic_0001>

<bundles_post_ra>
// kernel: run.6
= control target key start
LH: loop header
LB: loop body
LE: loop exit
PB: predicated region body
PF: predicated region fallthrough
CT: control target
= control target key end

     0   :  { %11 = vsyncpa [#allocation3], 0  ;;  %s746_s0 = inlined_call_operand.vmem [shape: f32[16,128], index: 0, kind: input, shape index: {}]   ;;  %s747_s1 = inlined_call_operand.hbm [shape: bf16[128,128], index: 1, kind: input, shape index: {}]   ;;  %s748_s2 = inlined_call_operand.vmem [shape: f32[1,128], index: 2, kind: input, shape index: {}]   ;;  %s749_s3 = inlined_call_operand.hbm [shape: bf16[2,128,128], index: 3, kind: input, shape index: {}]   ;;  %s750_s4 = inlined_call_operand.vmem [shape: f32[2,1,128], index: 4, kind: input, shape index: {}]   ;;  %s751_s5 = inlined_call_operand.hbm [shape: bf16[128,128], index: 5, kind: input, shape index: {}]   ;;  %s752_s6 = inlined_call_operand.vmem [shape: f32[16,128], index: 6, kind: output, shape index: {}]  }
   0x1   :  { %12 = vsyncpa [#allocation5], 0  ;;  %s34_s23 = sshll.u32 %s749_s3, 4  ;;  %s676_s24 = smov [#allocation4]   ;;  %s35_s23 = int_to_ptr.hbm [resolvable:$true] %s34_s23 }
   0x2   :  { %s36_s25 = sshll.u32 %s676_s24, 4  ;;  %s19_s28 = sshll.u32 %s747_s1, 4  ;;  %s37_s25 = int_to_ptr.vmem [resolvable:$true] %s36_s25  ;;  %s20_s28 = int_to_ptr.hbm [resolvable:$true] %s19_s28 }
   0x3   :  { %s677_s29 = smov 64   ;;  %s678_s30 = smov 4  }
   0x4   :  { %42 = dma.hbm_to_vmem [thread:$0]  %s35_s23, 2048, %s37_s25, [#allocation5], %s677_s29, %s677_s29, %s678_s30  }
   0x5   :  { %s679_s7 = smov [#allocation2]   ;;  %s49_s11 = sshll.u32 %s751_s5, 4  ;;  %s50_s11 = int_to_ptr.hbm [resolvable:$true] %s49_s11 }
   0x6   :  { %s21_s8 = sshll.u32 %s679_s7, 4  ;;  %s680_s3 = smov [#allocation6]   ;;  %s22_s8 = int_to_ptr.vmem [resolvable:$true] %s21_s8 }
   0x7   :  { %27 = dma.hbm_to_vmem [thread:$0]  %s20_s28, 1024, %s22_s8, [#allocation3], %s677_s29, %s677_s29, %s678_s30  }
   0x8   :  { %s51_s12 = sshll.u32 %s680_s3, 4  ;;  %s52_s12 = int_to_ptr.vmem [resolvable:$true] %s51_s12 }
   0x9   :  { %57 = dma.hbm_to_vmem [thread:$0]  %s50_s11, 1024, %s52_s12, [#allocation5], %s677_s29, %s677_s29, %s678_s30  }
   0xa   :  { %672 = dma.done.wait [#allocation3], 1024  }
   0xb   :  { %673 = vsyncadd [#allocation3], 4294966272 }
   0xc   :  { %674 = dma.done.wait [#allocation5], 3072  }
   0xd   :  { %675 = vsyncadd [#allocation5], 4294964224  ;;  %v567_v0 = vld [vmem:[#allocation2 + $0x38] sm:$0xff]  ;;  %v566_v1 = vld [vmem:[#allocation2 + $0x30] sm:$0xff] }
   0xe   :  { %141 = vmatpush.bf16.msra.mxu0 %v567_v0  ;;  %v575_v2 = vld [vmem:[#allocation4 + $0x38] sm:$0xff]  ;;  %v574_v3 = vld [vmem:[#allocation4 + $0x30] sm:$0xff]  ;;  %v565_v4 = vld [vmem:[#allocation2 + $0x28] sm:$0xff] }
   0xf   :  { %226 = vmatpush.bf16.msra.mxu1 %v575_v2  ;;  %v573_v5 = vld [vmem:[#allocation4 + $0x28] sm:$0xff]  ;;  %v564_v6 = vld [vmem:[#allocation2 + $0x20] sm:$0xff]  ;;  %v563_v8 = vld [vmem:[#allocation2 + $0x18] sm:$0xff] }
  0x10   :  { %v572_v7 = vld [vmem:[#allocation4 + $0x20] sm:$0xff]  ;;  %v562_v9 = vld [vmem:[#allocation2 + $0x10] sm:$0xff]  ;;  %v561_v10 = vld [vmem:[#allocation2 + $0x8] sm:$0xff] }
  0x11   :  { %v560_v11 = vld [vmem:[#allocation2] sm:$0xff]  ;;  %v71_v13 = vld [vmem:[%s746_s0 + $0x8] sm:$0xff]  ;;  %v571_v15 = vld [vmem:[#allocation4 + $0x18] sm:$0xff] }
  0x12   :  { %142 = vmatpush.bf16.msra.mxu0 %v566_v1  ;;  %v70_v12 = vld [vmem:[%s746_s0] sm:$0xff]  ;;  %v570_v16 = vld [vmem:[#allocation4 + $0x10] sm:$0xff]  ;;  %v569_v17 = vld [vmem:[#allocation4 + $0x8] sm:$0xff] }
  0x13   :  { %227 = vmatpush.bf16.msra.mxu1 %v574_v3  ;;  %v88_v14 = vpack.c.bf16 %v71_v13, %v70_v12  ;;  %v568_v18 = vld [vmem:[#allocation4] sm:$0xff]  ;;  %v583_v19 = vld [vmem:[#allocation4 + $0x78] sm:$0xff]  ;;  %v582_v20 = vld [vmem:[#allocation4 + $0x70] sm:$0xff] }
  0x14   :  { %315 = vmatpush.bf16.msra.mxu2 %v583_v19  ;;  %v581_v21 = vld [vmem:[#allocation4 + $0x68] sm:$0xff]  ;;  %v580_v22 = vld [vmem:[#allocation4 + $0x60] sm:$0xff]  ;;  %v579_v31 = vld [vmem:[#allocation4 + $0x58] sm:$0xff] }
  0x15   :  { %v597_v24 = vld [vmem:[%s748_s2] ss:$0 sm:$0xff]  ;;  %v578_v32 = vld [vmem:[#allocation4 + $0x50] sm:$0xff]  ;;  %v577_v33 = vld [vmem:[#allocation4 + $0x48] sm:$0xff] }
  0x16   :  { %143 = vmatpush.bf16.msra.mxu0 %v565_v4  ;;  %v576_v34 = vld [vmem:[#allocation4 + $0x40] sm:$0xff]  ;;  %v591_v35 = vld [vmem:[#allocation6 + $0x38] sm:$0xff]  ;;  %v590_v36 = vld [vmem:[#allocation6 + $0x30] sm:$0xff] }
  0x17   :  { %228 = vmatpush.bf16.msra.mxu1 %v573_v5  ;;  %398 = vmatpush.bf16.msra.mxu3 %v591_v35  ;;  %v589_v37 = vld [vmem:[#allocation6 + $0x28] sm:$0xff]  ;;  %v588_v38 = vld [vmem:[#allocation6 + $0x20] sm:$0xff]  ;;  %v587_v49 = vld [vmem:[#allocation6 + $0x18] sm:$0xff] }
  0x18   :  { %316 = vmatpush.bf16.msra.mxu2 %v582_v20  ;;  %v598_v40 = vld [vmem:[%s750_s4] ss:$0 sm:$0xff]  ;;  %v586_v50 = vld [vmem:[#allocation6 + $0x10] sm:$0xff]  ;;  %v585_v51 = vld [vmem:[#allocation6 + $0x8] sm:$0xff] }
  0x19   :  { %v584_v52 = vld [vmem:[#allocation6] sm:$0xff] }
  0x1a   :  { %144 = vmatpush.bf16.msra.mxu0 %v564_v6  ;;  %v599_v54 = vld [vmem:[%s750_s4 + $0x1] ss:$0 sm:$0xff] }
  0x1b   :  { %229 = vmatpush.bf16.msra.mxu1 %v572_v7  ;;  %399 = vmatpush.bf16.msra.mxu3 %v590_v36 }
  0x1c   :  { %317 = vmatpush.bf16.msra.mxu2 %v581_v21 }
  0x1e   :  { %145 = vmatpush.bf16.msra.mxu0 %v563_v8 }
  0x1f   :  { %230 = vmatpush.bf16.msra.mxu1 %v571_v15  ;;  %400 = vmatpush.bf16.msra.mxu3 %v589_v37 }
  0x20   :  { %318 = vmatpush.bf16.msra.mxu2 %v580_v22 }
  0x22   :  { %146 = vmatpush.bf16.msra.mxu0 %v562_v9 }
  0x23   :  { %231 = vmatpush.bf16.msra.mxu1 %v570_v16  ;;  %401 = vmatpush.bf16.msra.mxu3 %v588_v38 }
  0x24   :  { %319 = vmatpush.bf16.msra.mxu2 %v579_v31 }
  0x26   :  { %147 = vmatpush.bf16.msra.mxu0 %v561_v10 }
  0x27   :  { %232 = vmatpush.bf16.msra.mxu1 %v569_v17  ;;  %402 = vmatpush.bf16.msra.mxu3 %v587_v49 }
  0x28   :  { %320 = vmatpush.bf16.msra.mxu2 %v578_v32 }
  0x2a   :  { %148 = vmatpush.bf16.msra.mxu0 %v560_v11 }
  0x2b   :  { %233 = vmatpush.bf16.msra.mxu1 %v568_v18  ;;  %403 = vmatpush.bf16.msra.mxu3 %v586_v50 }
  0x2c   :  { %321 = vmatpush.bf16.msra.mxu2 %v577_v33 }
  0x2d   :  { %149 = vmatmul.bf16.vlgmr.msra.gmra.mxu0 %v88_v14 }
  0x2f   :  { %404 = vmatpush.bf16.msra.mxu3 %v585_v51 }
  0x30   :  { %322 = vmatpush.bf16.msra.mxu2 %v576_v34 }
  0x33   :  { %405 = vmatpush.bf16.msra.mxu3 %v584_v52 }
  0xaa   :  { %v150_v23 = vpop.f32.mrf.mxu0 }
  0xab   :  { %v151_v25 = vadd.f32 %v597_v24, %v150_v23 }
  0xad   :  { %v155_v28 = vmax.f32 %v151_v25, 0.0 }
  0xb2   :  { %v152_v26 = vpop.f32.mrf.mxu0 }
  0xb3   :  { %v153_v27 = vadd.f32 %v597_v24, %v152_v26 }
  0xb5   :  { %v156_v29 = vmax.f32 %v153_v27, 0.0 }
  0xb7   :  { %v173_v30 = vpack.c.bf16 %v156_v29, %v155_v28 }
  0xb9   :  { %234 = vmatmul.bf16.vlgmr.msra.gmra.mxu1 %v173_v30 }
 0x136   :  { %v235_v39 = vpop.f32.mrf.mxu1 }
 0x137   :  { %v236_v41 = vadd.f32 %v598_v40, %v235_v39 }
 0x139   :  { %v240_v43 = vmax.f32 %v236_v41, 0.0 }
 0x13b   :  { %v242_v46 = vadd.f32 %v240_v43, %v155_v28 }
 0x13e   :  { %v237_v42 = vpop.f32.mrf.mxu1 }
 0x13f   :  { %v238_v44 = vadd.f32 %v598_v40, %v237_v42 }
 0x141   :  { %v241_v45 = vmax.f32 %v238_v44, 0.0 }
 0x143   :  { %v243_v47 = vadd.f32 %v241_v45, %v156_v29 }
 0x145   :  { %v261_v48 = vpack.c.bf16 %v243_v47, %v242_v46 }
 0x147   :  { %323 = vmatmul.bf16.vlgmr.msra.gmra.mxu2 %v261_v48 }
 0x1ca   :  { %v324_v53 = vpop.f32.mrf.mxu2 }
 0x1cb   :  { %v325_v55 = vadd.f32 %v599_v54, %v324_v53 }
 0x1cd   :  { %v329_v57 = vmax.f32 %v325_v55, 0.0 }
 0x1cf   :  { %v331_v60 = vadd.f32 %v329_v57, %v242_v46 }
 0x1d2   :  { %v326_v56 = vpop.f32.mrf.mxu2 }
 0x1d3   :  { %v327_v58 = vadd.f32 %v599_v54, %v326_v56 }
 0x1d5   :  { %v330_v59 = vmax.f32 %v327_v58, 0.0 }
 0x1d7   :  { %v332_v61 = vadd.f32 %v330_v59, %v243_v47 }
 0x1d9   :  { %v349_v62 = vpack.c.bf16 %v332_v61, %v331_v60 }
 0x1db   :  { %406 = vmatmul.bf16.vlgmr.msra.gmra.mxu3 %v349_v62 }
 0x25e   :  { %v407_v63 = vpop.f32.mrf.mxu3 }
 0x25f   :  { %423 = vst [vmem:[%s752_s6] sm:$0xff] %v407_v63 }
 0x266   :  { %v409_v0 = vpop.f32.mrf.mxu3 }
 0x267   :  { %424 = vst [vmem:[%s752_s6 + $0x8] sm:$0xff] %v409_v0 }
 0x268   :  { %429 = vsyncpa [#allocation3], 1 }
 0x269   :  { %430 = vsyncpa [#allocation5], 1 }

// kernel: run.7
= control target key start
LH: loop header
LB: loop body
LE: loop exit
PB: predicated region body
PF: predicated region fallthrough
CT: control target
= control target key end

     0   :  { %18 = vsyncpa [#allocation3], 0  ;;  %s2138_s0 = inlined_call_operand.vmem [shape: f32[8,128], index: 0, kind: input, shape index: {}]   ;;  %s2139_s1 = inlined_call_operand.vmem [shape: f32[8,128], index: 1, kind: input, shape index: {}]   ;;  %s2140_s2 = inlined_call_operand.vmem [shape: bf16[128,384], index: 2, kind: input, shape index: {}]   ;;  %s2141_s3 = inlined_call_operand.vmem [shape: f32[1,384], index: 3, kind: input, shape index: {}]   ;;  %s2142_s4 = inlined_call_operand.hbm [shape: bf16[2,128,128], index: 4, kind: input, shape index: {}]   ;;  %s2143_s5 = inlined_call_operand.vmem [shape: f32[2,1,128], index: 5, kind: input, shape index: {}]   ;;  %s2144_s6 = inlined_call_operand.hbm [shape: bf16[128,128], index: 6, kind: input, shape index: {}]   ;;  %s2145_s7 = inlined_call_operand.hbm [shape: bf16[2,128,128], index: 7, kind: input, shape index: {}]   ;;  %s2146_s8 = inlined_call_operand.vmem [shape: f32[2,1,128], index: 8, kind: input, shape index: {}]   ;;  %s2147_s9 = inlined_call_operand.hbm [shape: bf16[128,128], index: 9, kind: input, shape index: {}]   ;;  %s2148_s10 = inlined_call_operand.hbm [shape: bf16[2,128,128], index: 10, kind: input, shape index: {}]   ;;  %s2149_s11 = inlined_call_operand.vmem [shape: f32[2,1,128], index: 11, kind: input, shape index: {}]   ;;  %s2150_s12 = inlined_call_operand.hbm [shape: bf16[128,128], index: 12, kind: input, shape index: {}]   ;;  %s2151_s13 = inlined_call_operand.vmem [shape: f32[8,128], index: 13, kind: output, shape index: {}]  }
   0x1   :  { %19 = vsyncpa [#allocation5], 0 }
   0x2   :  { %20 = vsyncpa [#allocation8], 0 }
   0x3   :  { %21 = vsyncpa [#allocation11], 0  ;;  %s49_s27 = sshll.u32 %s2144_s6, 4  ;;  %s1830_s28 = smov [#allocation4]   ;;  %s50_s27 = int_to_ptr.hbm [resolvable:$true] %s49_s27 }
   0x4   :  { %s51_s29 = sshll.u32 %s1830_s28, 4  ;;  %s77_s15 = sshll.u32 %s2147_s9, 4  ;;  %s52_s29 = int_to_ptr.vmem [resolvable:$true] %s51_s29  ;;  %s78_s15 = int_to_ptr.hbm [resolvable:$true] %s77_s15 }
   0x5   :  { %s1831_s16 = smov 64   ;;  %s1832_s17 = smov 4  }
   0x6   :  { %57 = dma.hbm_to_vmem [thread:$0]  %s50_s27, 1024, %s52_s29, [#allocation5], %s1831_s16, %s1831_s16, %s1832_s17  }
   0x7   :  { %s1833_s18 = smov [#allocation7]   ;;  %s34_s6 = sshll.u32 %s2142_s4, 4  ;;  %s35_s6 = int_to_ptr.hbm [resolvable:$true] %s34_s6 }
   0x8   :  { %s79_s19 = sshll.u32 %s1833_s18, 4  ;;  %s62_s23 = sshll.u32 %s2145_s7, 4  ;;  %s80_s19 = int_to_ptr.vmem [resolvable:$true] %s79_s19  ;;  %s63_s23 = int_to_ptr.hbm [resolvable:$true] %s62_s23 }
   0x9   :  { %85 = dma.hbm_to_vmem [thread:$0]  %s78_s15, 1024, %s80_s19, [#allocation8], %s1831_s16, %s1831_s16, %s1832_s17  }
   0xa   :  { %s1834_s24 = smov [#allocation2]   ;;  %s1835_s26 = smov [#allocation6]  }
   0xb   :  { %s36_s25 = sshll.u32 %s1834_s24, 4  ;;  %s64_s4 = sshll.u32 %s1835_s26, 4  ;;  %s37_s25 = int_to_ptr.vmem [resolvable:$true] %s36_s25  ;;  %s65_s4 = int_to_ptr.vmem [resolvable:$true] %s64_s4 }
   0xc   :  { %42 = dma.hbm_to_vmem [thread:$0]  %s35_s6, 2048, %s37_s25, [#allocation3], %s1831_s16, %s1831_s16, %s1832_s17  }
   0xd   :  { %s90_s29 = sshll.u32 %s2148_s10, 4  ;;  %s105_s14 = sshll.u32 %s2150_s12, 4  ;;  %s91_s29 = int_to_ptr.hbm [resolvable:$true] %s90_s29  ;;  %s106_s14 = int_to_ptr.hbm [resolvable:$true] %s105_s14 }
   0xe   :  { %70 = dma.hbm_to_vmem [thread:$0]  %s63_s23, 2048, %s65_s4, [#allocation5], %s1831_s16, %s1831_s16, %s1832_s17  }
   0xf   :  { %s1836_s15 = smov [#allocation9]   ;;  %s1837_s19 = smov [#allocation10]  }
  0x10   :  { %s92_s18 = sshll.u32 %s1836_s15, 4  ;;  %s107_s10 = sshll.u32 %s1837_s19, 4  ;;  %s93_s18 = int_to_ptr.vmem [resolvable:$true] %s92_s18  ;;  %s108_s10 = int_to_ptr.vmem [resolvable:$true] %s107_s10 }
  0x11   :  { %98 = dma.hbm_to_vmem [thread:$0]  %s91_s29, 2048, %s93_s18, [#allocation8], %s1831_s16, %s1831_s16, %s1832_s17  }
  0x12   :  { %113 = dma.hbm_to_vmem [thread:$0]  %s106_s14, 1024, %s108_s10, [#allocation11], %s1831_s16, %s1831_s16, %s1832_s17  }
  0x13   :  { %1822 = dma.done.wait [#allocation3], 2048  }
  0x14   :  { %1823 = vsyncadd [#allocation3], 4294965248 }
  0x15   :  { %1824 = dma.done.wait [#allocation5], 3072  }
  0x16   :  { %1825 = vsyncadd [#allocation5], 4294964224 }
  0x17   :  { %1826 = dma.done.wait [#allocation8], 3072  }
  0x18   :  { %1827 = vsyncadd [#allocation8], 4294964224 }
  0x19   :  { %1828 = dma.done.wait [#allocation11], 1024  }
  0x1a   :  { %1829 = vsyncadd [#allocation11], 4294966272  ;;  %v1255_v0 = vld [vmem:[%s2140_s2 + $0xa8] sm:$0xf]  ;;  %v1578_v1 = vld [vmem:[%s2140_s2 + $0xb0] sm:$0xf0] }
  0x1b   :  { %v1577_v2 = vld [vmem:[%s2140_s2 + $0xac] sm:$0xf]  ;;  %v1256_v3 = vor.u32 %v1578_v1, %v1255_v0  ;;  %v1257_v4 = vld [vmem:[%s2140_s2 + $0xb4] sm:$0xf0]  ;;  %v1243_v5 = vld [vmem:[%s2140_s2 + $0x90] sm:$0xf] }
  0x1c   :  { %v1575_v6 = vld [vmem:[%s2140_s2 + $0x98] sm:$0xf0]  ;;  %v1260_v7 = vor.u32 %v1577_v2, %v1257_v4  ;;  %v1574_v8 = vld [vmem:[%s2140_s2 + $0x94] sm:$0xf]  ;;  %v1245_v9 = vld [vmem:[%s2140_s2 + $0x9c] sm:$0xf0] }
  0x1d   :  { %308 = vmatpush.bf16.msra.mxu0 %v1256_v3  ;;  %v1244_v10 = vor.u32 %v1575_v6, %v1243_v5  ;;  %v1248_v11 = vor.u32 %v1574_v8, %v1245_v9  ;;  %v1231_v12 = vld [vmem:[%s2140_s2 + $0x78] sm:$0xf]  ;;  %v1572_v13 = vld [vmem:[%s2140_s2 + $0x80] sm:$0xf0]  ;;  %v1571_v14 = vld [vmem:[%s2140_s2 + $0x7c] sm:$0xf] }
  0x1e   :  { %321 = vmatpush.bf16.msra.mxu1 %v1260_v7  ;;  %v1233_v15 = vld [vmem:[%s2140_s2 + $0x84] sm:$0xf0]  ;;  %v1232_v16 = vor.u32 %v1572_v13, %v1231_v12  ;;  %v1219_v18 = vld [vmem:[%s2140_s2 + $0x60] sm:$0xf]  ;;  %v1569_v19 = vld [vmem:[%s2140_s2 + $0x68] sm:$0xf0] }
  0x1f   :  { %v1236_v17 = vor.u32 %v1571_v14, %v1233_v15  ;;  %v1568_v20 = vld [vmem:[%s2140_s2 + $0x64] sm:$0xf]  ;;  %v1221_v21 = vld [vmem:[%s2140_s2 + $0x6c] sm:$0xf0]  ;;  %v1220_v22 = vor.u32 %v1569_v19, %v1219_v18  ;;  %v1579_v24 = vld [vmem:[%s2140_s2 + $0xb8] sm:$0xf0] }
  0x20   :  { %v1263_v23 = vld [vmem:[%s2140_s2 + $0xb0] sm:$0xf]  ;;  %v1251_v25 = vld [vmem:[%s2140_s2 + $0x98] sm:$0xf]  ;;  %v1224_v26 = vor.u32 %v1568_v20, %v1221_v21  ;;  %v1207_v27 = vld [vmem:[%s2140_s2 + $0x48] sm:$0xf] }
  0x21   :  { %309 = vmatpush.bf16.msra.mxu0 %v1244_v10  ;;  %v1566_v28 = vld [vmem:[%s2140_s2 + $0x50] sm:$0xf0]  ;;  %v1264_v29 = vor.u32 %v1579_v24, %v1263_v23  ;;  %v1576_v30 = vld [vmem:[%s2140_s2 + $0xa0] sm:$0xf0]  ;;  %v1565_v31 = vld [vmem:[%s2140_s2 + $0x4c] sm:$0xf] }
  0x22   :  { %322 = vmatpush.bf16.msra.mxu1 %v1248_v11  ;;  %v1209_v32 = vld [vmem:[%s2140_s2 + $0x54] sm:$0xf0]  ;;  %v1252_v33 = vor.u32 %v1576_v30, %v1251_v25  ;;  %v1208_v34 = vor.u32 %v1566_v28, %v1207_v27  ;;  %v1239_v35 = vld [vmem:[%s2140_s2 + $0x80] sm:$0xf]  ;;  %v1573_v36 = vld [vmem:[%s2140_s2 + $0x88] sm:$0xf0] }
  0x23   :  { %334 = vmatpush.bf16.msra.mxu2 %v1264_v29  ;;  %v1212_v37 = vor.u32 %v1565_v31, %v1209_v32  ;;  %v1195_v38 = vld [vmem:[%s2140_s2 + $0x30] sm:$0xf]  ;;  %v1563_v39 = vld [vmem:[%s2140_s2 + $0x38] sm:$0xf0]  ;;  %v1562_v40 = vld [vmem:[%s2140_s2 + $0x34] sm:$0xf]  ;;  %v1240_v43 = vor.u32 %v1573_v36, %v1239_v35 }
  0x24   :  { %v1197_v41 = vld [vmem:[%s2140_s2 + $0x3c] sm:$0xf0]  ;;  %v1227_v42 = vld [vmem:[%s2140_s2 + $0x68] sm:$0xf]  ;;  %v1570_v44 = vld [vmem:[%s2140_s2 + $0x70] sm:$0xf0]  ;;  %v1196_v45 = vor.u32 %v1563_v39, %v1195_v38 }
  0x25   :  { %310 = vmatpush.bf16.msra.mxu0 %v1232_v16  ;;  %v1200_v46 = vor.u32 %v1562_v40, %v1197_v41  ;;  %v1183_v47 = vld [vmem:[%s2140_s2 + $0x18] sm:$0xf]  ;;  %v1560_v48 = vld [vmem:[%s2140_s2 + $0x20] sm:$0xf0]  ;;  %v1559_v49 = vld [vmem:[%s2140_s2 + $0x1c] sm:$0xf]  ;;  %v1228_v51 = vor.u32 %v1570_v44, %v1227_v42 }
  0x26   :  { %323 = vmatpush.bf16.msra.mxu1 %v1236_v17  ;;  %v1185_v50 = vld [vmem:[%s2140_s2 + $0x24] sm:$0xf0]  ;;  %v1184_v52 = vor.u32 %v1560_v48, %v1183_v47  ;;  %v1215_v53 = vld [vmem:[%s2140_s2 + $0x50] sm:$0xf]  ;;  %v1567_v54 = vld [vmem:[%s2140_s2 + $0x58] sm:$0xf0] }
  0x27   :  { %335 = vmatpush.bf16.msra.mxu2 %v1252_v33  ;;  %v1188_v55 = vor.u32 %v1559_v49, %v1185_v50  ;;  %v1171_v56 = vld [vmem:[%s2140_s2] sm:$0xf]  ;;  %v1557_v57 = vld [vmem:[%s2140_s2 + $0x8] sm:$0xf0]  ;;  %v1556_v58 = vld [vmem:[%s2140_s2 + $0x4] sm:$0xf]  ;;  %v1216_v60 = vor.u32 %v1567_v54, %v1215_v53 }
  0x28   :  { %v1173_v59 = vld [vmem:[%s2140_s2 + $0xc] sm:$0xf0]  ;;  %v1172_v61 = vor.u32 %v1557_v57, %v1171_v56  ;;  %v2073_v62 = vld [vmem:[%s2138_s0] sm:$0xff]  ;;  %v1203_v63 = vld [vmem:[%s2140_s2 + $0x38] sm:$0xf] }
  0x29   :  { %311 = vmatpush.bf16.msra.mxu0 %v1220_v22  ;;  %v1564_v0 = vld [vmem:[%s2140_s2 + $0x40] sm:$0xf0]  ;;  %v1176_v1 = vor.u32 %v1556_v58, %v1173_v59  ;;  %v1603_v2 = vld [vmem:[#allocation6 + $0x38] sm:$0xff]  ;;  %v171_v3 = vpack.c.bf16 %v2073_v62, %v2073_v62  ;;  %v1191_v5 = vld [vmem:[%s2140_s2 + $0x20] sm:$0xf] }
  0x2a   :  { %324 = vmatpush.bf16.msra.mxu1 %v1224_v26  ;;  %v1204_v4 = vor.u32 %v1564_v0, %v1203_v63  ;;  %v1561_v6 = vld [vmem:[%s2140_s2 + $0x28] sm:$0xf0]  ;;  %v1602_v7 = vld [vmem:[#allocation6 + $0x30] sm:$0xff]  ;;  %v1179_v9 = vld [vmem:[%s2140_s2 + $0x8] sm:$0xf] }
  0x2b   :  { %336 = vmatpush.bf16.msra.mxu2 %v1240_v43  ;;  %v1192_v8 = vor.u32 %v1561_v6, %v1191_v5  ;;  %v1558_v10 = vld [vmem:[%s2140_s2 + $0x10] sm:$0xf0]  ;;  %v1601_v11 = vld [vmem:[#allocation6 + $0x28] sm:$0xff]  ;;  %v1600_v13 = vld [vmem:[#allocation6 + $0x20] sm:$0xff] }
  0x2c   :  { %v1180_v12 = vor.u32 %v1558_v10, %v1179_v9  ;;  %v1599_v14 = vld [vmem:[#allocation6 + $0x18] sm:$0xff]  ;;  %v1598_v15 = vld [vmem:[#allocation6 + $0x10] sm:$0xff]  ;;  %v1597_v16 = vld [vmem:[#allocation6 + $0x8] sm:$0xff] }
  0x2d   :  { %312 = vmatpush.bf16.msra.mxu0 %v1208_v34  ;;  %v1596_v17 = vld [vmem:[#allocation6] sm:$0xff]  ;;  %v1587_v18 = vld [vmem:[#allocation2 + $0x38] sm:$0xff]  ;;  %v1586_v19 = vld [vmem:[#allocation2 + $0x30] sm:$0xff] }
  0x2e   :  { %325 = vmatpush.bf16.msra.mxu1 %v1212_v37  ;;  %441 = vmatpush.bf16.msra.mxu3 %v1587_v18  ;;  %v1585_v20 = vld [vmem:[#allocation2 + $0x28] sm:$0xff]  ;;  %v1584_v21 = vld [vmem:[#allocation2 + $0x20] sm:$0xff]  ;;  %v1583_v22 = vld [vmem:[#allocation2 + $0x18] sm:$0xff] }
  0x2f   :  { %337 = vmatpush.bf16.msra.mxu2 %v1228_v51  ;;  %v2098_v23 = vld [vmem:[%s2141_s3] sm:$0x7]  ;;  %v1582_v24 = vld [vmem:[#allocation2 + $0x10] sm:$0xff]  ;;  %v1581_v27 = vld [vmem:[#allocation2 + $0x8] sm:$0xff] }
  0x30   :  { %v174_v25 = vperm.slane %v2098_v23, 0  ;;  %v175_v26 = vperm.slane %v2098_v23, 1  ;;  %v1580_v32 = vld [vmem:[#allocation2] sm:$0xff]  ;;  %v1619_v39 = vld [vmem:[#allocation9 + $0x38] sm:$0xff]  ;;  %v1618_v41 = vld [vmem:[#allocation9 + $0x30] sm:$0xff] }
  0x31   :  { %313 = vmatpush.bf16.msra.mxu0 %v1196_v45  ;;  %v1617_v42 = vld [vmem:[#allocation9 + $0x28] sm:$0xff]  ;;  %v1615_v47 = vld [vmem:[#allocation9 + $0x18] sm:$0xff]  ;;  %v1610_v53 = vld [vmem:[#allocation6 + $0x70] sm:$0xff] }
  0x32   :  { %326 = vmatpush.bf16.msra.mxu1 %v1200_v46  ;;  %442 = vmatpush.bf16.msra.mxu3 %v1586_v19  ;;  %v1616_v46 = vld [vmem:[#allocation9 + $0x20] sm:$0xff]  ;;  %v1611_v49 = vld [vmem:[#allocation6 + $0x78] sm:$0xff]  ;;  %v1613_v58 = vld [vmem:[#allocation9 + $0x8] sm:$0xff] }
  0x33   :  { %338 = vmatpush.bf16.msra.mxu2 %v1216_v60  ;;  %v1609_v59 = vld [vmem:[#allocation6 + $0x68] sm:$0xff]  ;;  %v1607_v6 = vld [vmem:[#allocation6 + $0x58] sm:$0xff] }
  0x35   :  { %314 = vmatpush.bf16.msra.mxu0 %v1184_v52  ;;  %v1614_v52 = vld [vmem:[#allocation9 + $0x10] sm:$0xff] }
  0x36   :  { %327 = vmatpush.bf16.msra.mxu1 %v1188_v55  ;;  %443 = vmatpush.bf16.msra.mxu3 %v1585_v20  ;;  %v1594_v20 = vld [vmem:[#allocation2 + $0x70] sm:$0xff] }
  0x37   :  { %339 = vmatpush.bf16.msra.mxu2 %v1204_v4 }
  0x39   :  { %315 = vmatpush.bf16.msra.mxu0 %v1172_v61 }
  0x3a   :  { %328 = vmatpush.bf16.msra.mxu1 %v1176_v1  ;;  %444 = vmatpush.bf16.msra.mxu3 %v1584_v21  ;;  %v1612_v1 = vld [vmem:[#allocation9] sm:$0xff] }
  0x3b   :  { %340 = vmatpush.bf16.msra.mxu2 %v1192_v8  ;;  %v1606_v8 = vld [vmem:[#allocation6 + $0x50] sm:$0xff] }
  0x3c   :  { %316 = vmatmul.bf16.vlgmr.msra.gmra.mxu0 %v171_v3 }
  0x3d   :  { %329 = vmatmul.bf16.vlgmr.msra.gmra.mxu1 %v171_v3 }
  0x3e   :  { %653 = vmatpush.bf16.msrb.mxu1 %v1603_v2  ;;  %445 = vmatpush.bf16.msra.mxu3 %v1583_v22  ;;  %v1608_v2 = vld [vmem:[#allocation6 + $0x60] sm:$0xff] }
  0x3f   :  { %341 = vmatpush.bf16.msra.mxu2 %v1180_v12  ;;  %v1605_v12 = vld [vmem:[#allocation6 + $0x48] sm:$0xff] }
  0x42   :  { %654 = vmatpush.bf16.msrb.mxu1 %v1602_v7  ;;  %342 = vmatmul.bf16.vlgmr.msra.gmra.mxu2 %v171_v3  ;;  %v176_v7 = vperm.slane %v2098_v23, 2  ;;  %v1593_v23 = vld [vmem:[#allocation2 + $0x68] sm:$0xff] }
  0x43   :  { %446 = vmatpush.bf16.msra.mxu3 %v1582_v24  ;;  %739 = vmatpush.bf16.msrb.mxu2 %v1611_v49  ;;  %v1592_v24 = vld [vmem:[#allocation2 + $0x60] sm:$0xff]  ;;  %v1643_v49 = vld [vmem:[#allocation7 + $0x38] sm:$0xff] }
  0x46   :  { %655 = vmatpush.bf16.msrb.mxu1 %v1601_v11 }
  0x47   :  { %447 = vmatpush.bf16.msra.mxu3 %v1581_v27  ;;  %740 = vmatpush.bf16.msrb.mxu2 %v1610_v53  ;;  %v1589_v27 = vld [vmem:[#allocation2 + $0x48] sm:$0xff] }
  0x4a   :  { %656 = vmatpush.bf16.msrb.mxu1 %v1600_v13  ;;  %v1604_v13 = vld [vmem:[#allocation6 + $0x40] sm:$0xff] }
  0x4b   :  { %448 = vmatpush.bf16.msra.mxu3 %v1580_v32  ;;  %741 = vmatpush.bf16.msrb.mxu2 %v1609_v59  ;;  %v1625_v32 = vld [vmem:[#allocation9 + $0x68] sm:$0xff] }
  0x4e   :  { %657 = vmatpush.bf16.msrb.mxu1 %v1599_v14  ;;  %v1595_v14 = vld [vmem:[#allocation2 + $0x78] sm:$0xff] }
  0x4f   :  { %823 = vmatpush.bf16.msrb.mxu3 %v1619_v39  ;;  %742 = vmatpush.bf16.msrb.mxu2 %v1608_v2  ;;  %v1639_v2 = vld [vmem:[#allocation7 + $0x18] sm:$0xff] }
  0x50   :  { %548 = vmatpush.bf16.msrb.mxu0 %v1595_v14 }
  0x52   :  { %658 = vmatpush.bf16.msrb.mxu1 %v1598_v15  ;;  %v1660_v15 = vld [vmem:[%s2146_s8] ss:$0 sm:$0xff] }
  0x53   :  { %824 = vmatpush.bf16.msrb.mxu3 %v1618_v41  ;;  %743 = vmatpush.bf16.msrb.mxu2 %v1607_v6  ;;  %v1622_v41 = vld [vmem:[#allocation9 + $0x50] sm:$0xff] }
  0x54   :  { %549 = vmatpush.bf16.msrb.mxu0 %v1594_v20  ;;  %v1649_v20 = vld [vmem:[#allocation10 + $0x28] sm:$0xff] }
  0x56   :  { %659 = vmatpush.bf16.msrb.mxu1 %v1597_v16 }
  0x57   :  { %825 = vmatpush.bf16.msrb.mxu3 %v1617_v42  ;;  %744 = vmatpush.bf16.msrb.mxu2 %v1606_v8  ;;  %v1621_v42 = vld [vmem:[#allocation9 + $0x48] sm:$0xff] }
  0x58   :  { %550 = vmatpush.bf16.msrb.mxu0 %v1593_v23  ;;  %v1637_v8 = vld [vmem:[#allocation7 + $0x8] sm:$0xff]  ;;  %v1635_v23 = vld [vmem:[#allocation4 + $0x38] sm:$0xff] }
  0x5a   :  { %660 = vmatpush.bf16.msrb.mxu1 %v1596_v17 }
  0x5b   :  { %826 = vmatpush.bf16.msrb.mxu3 %v1616_v46  ;;  %745 = vmatpush.bf16.msrb.mxu2 %v1605_v12  ;;  %v1620_v46 = vld [vmem:[#allocation9 + $0x40] sm:$0xff] }
  0x5c   :  { %551 = vmatpush.bf16.msrb.mxu0 %v1592_v24  ;;  %v1663_v12 = vld [vmem:[%s2146_s8 + $0x1] ss:$0 sm:$0xff]  ;;  %v1646_v24 = vld [vmem:[#allocation10 + $0x10] sm:$0xff] }
  0x5e   :  { %987 = vmatpush.bf16.msra.mxu1 %v1635_v23 }
  0x5f   :  { %827 = vmatpush.bf16.msrb.mxu3 %v1615_v47  ;;  %746 = vmatpush.bf16.msrb.mxu2 %v1604_v13 }
  0x63   :  { %828 = vmatpush.bf16.msrb.mxu3 %v1614_v52 }
  0x67   :  { %829 = vmatpush.bf16.msrb.mxu3 %v1613_v58 }
  0x6b   :  { %830 = vmatpush.bf16.msrb.mxu3 %v1612_v1 }
  0xb9   :  { %v317_v28 = vpop.f32.mrf.mxu0 }
  0xba   :  { %v318_v29 = vadd.f32 %v317_v28, %v174_v25  ;;  %v330_v30 = vpop.f32.mrf.mxu1  ;;  %v1591_v25 = vld [vmem:[#allocation2 + $0x58] sm:$0xff]  ;;  %v1588_v28 = vld [vmem:[#allocation2 + $0x40] sm:$0xff] }
  0xbb   :  { %v331_v31 = vadd.f32 %v330_v30, %v175_v26  ;;  %552 = vmatpush.bf16.msrb.mxu0 %v1591_v25  ;;  %v1590_v26 = vld [vmem:[#allocation2 + $0x50] sm:$0xff] }
  0xbc   :  { %v347_v33 = vand.u32 2147483647, %v318_v29  ;;  %vm367_vm4 = vcmp.ge.f32.partialorder %v318_v29, 0.0  ;;  %v1627_v29 = vld [vmem:[#allocation9 + $0x78] sm:$0xff]  ;;  %v1626_v30 = vld [vmem:[#allocation9 + $0x70] sm:$0xff] }
  0xbd   :  { %v2102_v34 = vmax.f32 %v331_v31, 0.0  ;;  %v1661_v31 = vld [vmem:[%s2143_s5] ss:$0 sm:$0xff]  ;;  %v1634_v25 = vld [vmem:[#allocation4 + $0x30] sm:$0xff] }
  0xbe   :  { %v348_v35 = vsub.f32 0.0, %v347_v33  ;;  %988 = vmatpush.bf16.msra.mxu1 %v1634_v25 }
  0xbf   :  { %v600_v36 = vpack.c.bf16 %v2102_v34, %v2102_v34  ;;  %553 = vmatpush.bf16.msrb.mxu0 %v1590_v26  ;;  %v1645_v26 = vld [vmem:[#allocation10 + $0x8] sm:$0xff] }
  0xc0   :  { %v349_v37 = vmul.f32 1.442695, %v348_v35  ;;  %v1624_v35 = vld [vmem:[#allocation9 + $0x60] sm:$0xff] }
  0xc1   :  { %661 = vmatmul.bf16.vlgmr.msrb.gmra.mxu1 %v600_v36  ;;  %v319_v38 = vpop.f32.mrf.mxu0 }
  0xc2   :  { %1666 = vpow2.f32 %v349_v37  ;;  %v332_v40 = vpop.f32.mrf.mxu1 }
  0xc3   :  { %554 = vmatpush.bf16.msrb.mxu0 %v1589_v27  ;;  %v1623_v40 = vld [vmem:[#allocation9 + $0x58] sm:$0xff]  ;;  %v1633_v27 = vld [vmem:[#allocation4 + $0x28] sm:$0xff] }
  0xc4   :  { %989 = vmatpush.bf16.msra.mxu1 %v1633_v27 }
  0xc5   :  { %v343_v45 = vpop.f32.mrf.mxu2 }
  0xc6   :  { %v344_v9 = vadd.f32 %v343_v45, %v176_v7 }
  0xc7   :  { %555 = vmatpush.bf16.msrb.mxu0 %v1588_v28  ;;  %v1632_v28 = vld [vmem:[#allocation4 + $0x20] sm:$0xff] }
  0xc8   :  { %v1667_v43 = vpop.eup %1666  ;;  %v371_v10 = vmax.f32 %v344_v9, 0.0  ;;  %v1636_v9 = vld [vmem:[#allocation7] sm:$0xff]  ;;  %990 = vmatpush.bf16.msra.mxu1 %v1632_v28 }
  0xc9   :  { %v351_v44 = vadd.f32 1.0, %v1667_v43 }
  0xca   :  { %v770_v11 = vpack.c.bf16 %v371_v10, %v371_v10  ;;  %v1651_v10 = vld [vmem:[#allocation10 + $0x38] sm:$0xff] }
  0xcb   :  { %1668 = vrcp.f32 %v351_v44  ;;  %v363_v55 = vand.u32 2147483648, %v351_v44  ;;  %v361_v57 = vand.u32 2147483647, %v351_v44  ;;  %vm357_vm1 = vweird.f32 %v351_v44  ;;  %908 = vmatpush.bf16.msra.mxu0 %v1627_v29  ;;  %1082 = vmatpush.bf16.msra.mxu2 %v1651_v10  ;;  %v1631_v29 = vld [vmem:[#allocation4 + $0x18] sm:$0xff] }
  0xcc   :  { %991 = vmatpush.bf16.msra.mxu1 %v1631_v29 }
  0xcd   :  { %v345_v51 = vpop.f32.mrf.mxu2  ;;  %v364_v61 = vor.u32 1.1754944e-38, %v363_v55  ;;  %vm362_vm3 = vcmp.eq.f32.partialorder %v361_v57, 8.507059e+37 }
  0xce   :  { %v1642_v51 = vld [vmem:[#allocation7 + $0x30] sm:$0xff] }
  0xcf   :  { %909 = vmatpush.bf16.msra.mxu0 %v1626_v30  ;;  %v1630_v30 = vld [vmem:[#allocation4 + $0x10] sm:$0xff] }
  0xd0   :  { %992 = vmatpush.bf16.msra.mxu1 %v1630_v30 }
  0xd1   :  { %v1669_v48 = vpop.eup %1668 }
  0xd2   :  { %v353_v50 = vmul.f32 %v1669_v48, %v351_v44  ;;  %vm358_vm0 = vweird.f32 %v1669_v48 }
  0xd3   :  { %vm359_vm2 = vmor %vm357_vm1, %vm358_vm0  ;;  %910 = vmatpush.bf16.msra.mxu0 %v1625_v32 }
  0xd4   :  { %v354_v54 = vsub.f32 1.0, %v353_v50 }
  0xd6   :  { %v355_v56 = vmul.f32 %v1669_v48, %v354_v54 }
  0xd7   :  { %911 = vmatpush.bf16.msra.mxu0 %v1624_v35 }
  0xd8   :  { %v356_v60 = vadd.f32 %v1669_v48, %v355_v56  ;;  %v1641_v56 = vld [vmem:[#allocation7 + $0x28] sm:$0xff] }
  0xda   :  { %v360_v63 = vsel %vm359_vm2, %v1669_v48, %v356_v60 }
  0xdb   :  { %v365_v0 = vsel %vm362_vm3, %v364_v61, %v360_v63  ;;  %912 = vmatpush.bf16.msra.mxu0 %v1623_v40  ;;  %v1640_v61 = vld [vmem:[#allocation7 + $0x20] sm:$0xff] }
  0xdc   :  { %v368_v3 = vmul.f32 %v1667_v43, %v365_v0  ;;  %v1665_v40 = vld [vmem:[%s2149_s11 + $0x1] ss:$0 sm:$0xff] }
  0xde   :  { %v369_v4 = vsel %vm367_vm4, %v365_v0, %v368_v3  ;;  %v1662_v3 = vld [vmem:[%s2149_s11] ss:$0 sm:$0xff] }
  0xdf   :  { %v388_v5 = vpack.c.bf16 %v369_v4, %v369_v4  ;;  %913 = vmatpush.bf16.msra.mxu0 %v1622_v41  ;;  %v1638_v4 = vld [vmem:[#allocation7 + $0x10] sm:$0xff] }
  0xe1   :  { %449 = vmatmul.bf16.vlgmr.msra.gmra.mxu3 %v388_v5 }
  0xe2   :  { %1144 = vmatpush.bf16.msra.mxu3 %v1643_v49 }
  0xe3   :  { %914 = vmatpush.bf16.msra.mxu0 %v1621_v42 }
  0xe6   :  { %1145 = vmatpush.bf16.msra.mxu3 %v1642_v51 }
  0xe7   :  { %915 = vmatpush.bf16.msra.mxu0 %v1620_v46 }
  0xea   :  { %1146 = vmatpush.bf16.msra.mxu3 %v1641_v56 }
  0xee   :  { %1147 = vmatpush.bf16.msra.mxu3 %v1640_v61 }
  0xf1   :  { %831 = vmatmul.bf16.vlgmr.msrb.gmra.mxu3 %v770_v11  ;;  %v1650_v11 = vld [vmem:[#allocation10 + $0x30] sm:$0xff] }
  0xf2   :  { %1148 = vmatpush.bf16.msra.mxu3 %v1639_v2  ;;  %1083 = vmatpush.bf16.msra.mxu2 %v1650_v11 }
  0xf6   :  { %1149 = vmatpush.bf16.msra.mxu3 %v1638_v4  ;;  %1084 = vmatpush.bf16.msra.mxu2 %v1649_v20 }
  0xfa   :  { %1150 = vmatpush.bf16.msra.mxu3 %v1637_v8 }
  0xfe   :  { %1151 = vmatpush.bf16.msra.mxu3 %v1636_v9 }
 0x13e   :  { %v662_v16 = vpop.f32.mrf.mxu1 }
 0x13f   :  { %v663_v17 = vadd.f32 %v1660_v15, %v662_v16 }
 0x141   :  { %v666_v18 = vmax.f32 %v663_v17, 0.0 }
 0x143   :  { %v2111_v19 = vadd.f32 %v666_v18, %v2102_v34 }
 0x145   :  { %v685_v21 = vpack.c.bf16 %v2111_v19, %v2111_v19 }
 0x146   :  { %v664_v22 = vpop.f32.mrf.mxu1 }
 0x147   :  { %747 = vmatmul.bf16.vlgmr.msrb.gmra.mxu2 %v685_v21  ;;  %v1648_v21 = vld [vmem:[#allocation10 + $0x20] sm:$0xff]  ;;  %v1647_v22 = vld [vmem:[#allocation10 + $0x18] sm:$0xff] }
 0x148   :  { %1085 = vmatpush.bf16.msra.mxu2 %v1648_v21 }
 0x14c   :  { %1086 = vmatpush.bf16.msra.mxu2 %v1647_v22 }
 0x150   :  { %1087 = vmatpush.bf16.msra.mxu2 %v1646_v24 }
 0x154   :  { %1088 = vmatpush.bf16.msra.mxu2 %v1645_v26 }
 0x164   :  { %v450_v33 = vpop.f32.mrf.mxu3 }
 0x165   :  { %v451_v34 = vadd.f32 %v1661_v31, %v450_v33  ;;  %v1664_v31 = vld [vmem:[%s2143_s5 + $0x1] ss:$0 sm:$0xff]  ;;  %v1629_v33 = vld [vmem:[#allocation4 + $0x8] sm:$0xff] }
 0x166   :  { %993 = vmatpush.bf16.msra.mxu1 %v1629_v33 }
 0x167   :  { %v454_v36 = vand.u32 2147483647, %v451_v34  ;;  %vm474_vm9 = vcmp.ge.f32.partialorder %v451_v34, 0.0 }
 0x169   :  { %v455_v37 = vsub.f32 0.0, %v454_v36  ;;  %v1628_v36 = vld [vmem:[#allocation4] sm:$0xff] }
 0x16a   :  { %994 = vmatpush.bf16.msra.mxu1 %v1628_v36 }
 0x16b   :  { %v456_v38 = vmul.f32 1.442695, %v455_v37 }
 0x16c   :  { %v452_v39 = vpop.f32.mrf.mxu3 }
 0x16d   :  { %1670 = vpow2.f32 %v456_v38 }
 0x173   :  { %v1671_v43 = vpop.eup %1670 }
 0x174   :  { %v458_v44 = vadd.f32 1.0, %v1671_v43  ;;  %v832_v45 = vpop.f32.mrf.mxu3 }
 0x175   :  { %v833_v5 = vadd.f32 %v1662_v3, %v832_v45 }
 0x176   :  { %1672 = vrcp.f32 %v458_v44  ;;  %v470_v53 = vand.u32 2147483648, %v458_v44  ;;  %v468_v55 = vand.u32 2147483647, %v458_v44  ;;  %vm464_vm6 = vweird.f32 %v458_v44 }
 0x177   :  { %v836_v6 = vmax.f32 %v833_v5, 0.0  ;;  %v1158_v5 = vld [vmem:[%s2139_s1] sm:$0xff] }
 0x178   :  { %v471_v58 = vor.u32 1.1754944e-38, %v470_v53  ;;  %vm469_vm8 = vcmp.eq.f32.partialorder %v468_v55, 8.507059e+37 }
 0x179   :  { %v854_v7 = vpack.c.bf16 %v836_v6, %v836_v6 }
 0x17c   :  { %v1673_v47 = vpop.eup %1672  ;;  %v834_v48 = vpop.f32.mrf.mxu3 }
 0x17d   :  { %v460_v50 = vmul.f32 %v1673_v47, %v458_v44  ;;  %vm465_vm5 = vweird.f32 %v1673_v47 }
 0x17e   :  { %vm466_vm7 = vmor %vm464_vm6, %vm465_vm5 }
 0x17f   :  { %v461_v52 = vsub.f32 1.0, %v460_v50 }
 0x181   :  { %v462_v54 = vmul.f32 %v1673_v47, %v461_v52 }
 0x183   :  { %v463_v57 = vadd.f32 %v1673_v47, %v462_v54 }
 0x185   :  { %v467_v59 = vsel %vm466_vm7, %v1673_v47, %v463_v57 }
 0x186   :  { %v472_v60 = vsel %vm469_vm8, %v471_v58, %v467_v59 }
 0x187   :  { %v475_v63 = vmul.f32 %v1671_v43, %v472_v60 }
 0x189   :  { %v476_v0 = vsel %vm474_vm9, %v472_v60, %v475_v63 }
 0x18a   :  { %v494_v1 = vpack.c.bf16 %v476_v0, %v476_v0 }
 0x18c   :  { %556 = vmatmul.bf16.vlgmr.msrb.gmra.mxu0 %v494_v1 }
 0x19c   :  { %916 = vmatmul.bf16.vlgmr.msra.gmra.mxu0 %v854_v7 }
 0x1ca   :  { %v748_v13 = vpop.f32.mrf.mxu2 }
 0x1cb   :  { %v749_v14 = vadd.f32 %v1663_v12, %v748_v13 }
 0x1cd   :  { %v752_v15 = vmax.f32 %v749_v14, 0.0 }
 0x1cf   :  { %v753_v16 = vadd.f32 %v752_v15, %v2111_v19  ;;  %v1644_v19 = vld [vmem:[#allocation10] sm:$0xff] }
 0x1d0   :  { %1089 = vmatpush.bf16.msra.mxu2 %v1644_v19 }
 0x1d1   :  { %v1016_v17 = vpack.c.bf16 %v753_v16, %v753_v16 }
 0x1d2   :  { %v750_v18 = vpop.f32.mrf.mxu2 }
 0x1d3   :  { %1152 = vmatmul.bf16.vlgmr.msra.gmra.mxu3 %v1016_v17 }
 0x209   :  { %v557_v32 = vpop.f32.mrf.mxu0 }
 0x20a   :  { %v558_v34 = vadd.f32 %v1664_v31, %v557_v32 }
 0x20c   :  { %v561_v35 = vand.u32 2147483647, %v558_v34  ;;  %vm581_vm14 = vcmp.ge.f32.partialorder %v558_v34, 0.0 }
 0x20e   :  { %v562_v37 = vsub.f32 0.0, %v561_v35 }
 0x210   :  { %v563_v38 = vmul.f32 1.442695, %v562_v37 }
 0x211   :  { %v559_v39 = vpop.f32.mrf.mxu0 }
 0x212   :  { %1674 = vpow2.f32 %v563_v38 }
 0x218   :  { %v1675_v41 = vpop.eup %1674 }
 0x219   :  { %v565_v42 = vadd.f32 1.0, %v1675_v41  ;;  %v917_v43 = vpop.f32.mrf.mxu0 }
 0x21a   :  { %v918_v44 = vadd.f32 %v1665_v40, %v917_v43 }
 0x21b   :  { %1676 = vrcp.f32 %v565_v42  ;;  %v577_v51 = vand.u32 2147483648, %v565_v42  ;;  %v575_v53 = vand.u32 2147483647, %v565_v42  ;;  %vm571_vm11 = vweird.f32 %v565_v42 }
 0x21c   :  { %v921_v45 = vmax.f32 %v918_v44, 0.0 }
 0x21d   :  { %v578_v55 = vor.u32 1.1754944e-38, %v577_v51  ;;  %vm576_vm13 = vcmp.eq.f32.partialorder %v575_v53, 8.507059e+37 }
 0x21e   :  { %v1033_v46 = vpack.c.bf16 %v921_v45, %v921_v45 }
 0x220   :  { %1090 = vmatmul.bf16.vlgmr.msra.gmra.mxu2 %v1033_v46 }
 0x221   :  { %v1677_v47 = vpop.eup %1676  ;;  %v919_v48 = vpop.f32.mrf.mxu0 }
 0x222   :  { %v567_v49 = vmul.f32 %v1677_v47, %v565_v42  ;;  %vm572_vm10 = vweird.f32 %v1677_v47 }
 0x223   :  { %vm573_vm12 = vmor %vm571_vm11, %vm572_vm10 }
 0x224   :  { %v568_v50 = vsub.f32 1.0, %v567_v49 }
 0x226   :  { %v569_v52 = vmul.f32 %v1677_v47, %v568_v50 }
 0x228   :  { %v570_v54 = vadd.f32 %v1677_v47, %v569_v52 }
 0x22a   :  { %v574_v56 = vsel %vm573_vm12, %v1677_v47, %v570_v54 }
 0x22b   :  { %v579_v57 = vsel %vm576_vm13, %v578_v55, %v574_v56 }
 0x22c   :  { %v582_v58 = vmul.f32 %v1675_v41, %v579_v57 }
 0x22e   :  { %v583_v59 = vsel %vm581_vm14, %v579_v57, %v582_v58 }
 0x22f   :  { %v938_v60 = vpack.c.bf16 %v583_v59, %v583_v59 }
 0x231   :  { %995 = vmatmul.bf16.vlgmr.msra.gmra.mxu1 %v938_v60 }
 0x256   :  { %v1153_v61 = vpop.f32.mrf.mxu3 }
 0x25e   :  { %v1155_v63 = vpop.f32.mrf.mxu3 }
 0x2a3   :  { %v1091_v0 = vpop.f32.mrf.mxu2 }
 0x2a4   :  { %v1095_v1 = vmul.f32 %v1091_v0, %v2073_v62 }
 0x2a6   :  { %v1154_v3 = vadd.f32 %v1153_v61, %v1095_v1 }
 0x2ab   :  { %v1093_v2 = vpop.f32.mrf.mxu2 }
 0x2ae   :  { %v996_v4 = vpop.f32.mrf.mxu1 }
 0x2af   :  { %v1157_v6 = vmul.f32 %v1154_v3, %v996_v4 }
 0x2b1   :  { %v1159_v7 = vadd.f32 %v1158_v5, %v1157_v6 }
 0x2b3   :  { %1160 = vst [vmem:[%s2151_s13] sm:$0xff] %v1159_v7 }
 0x2b6   :  { %v998_v8 = vpop.f32.mrf.mxu1 }
 0x2b7   :  { %1165 = vsyncpa [#allocation3], 1 }
 0x2b8   :  { %1166 = vsyncpa [#allocation5], 1 }
 0x2b9   :  { %1167 = vsyncpa [#allocation8], 1 }
 0x2ba   :  { %1168 = vsyncpa [#allocation11], 1 }

// kernel: run.11
= control target key start
LH: loop header
LB: loop body
LE: loop exit
PB: predicated region body
PF: predicated region fallthrough
CT: control target
= control target key end

     0   :  { %18 = vsyncpa [#allocation3], 0  ;;  %s2179_s0 = inlined_call_operand.vmem [shape: f32[8,128], index: 0, kind: input, shape index: {}]   ;;  %s2180_s1 = inlined_call_operand.vmem [shape: f32[8,128], index: 1, kind: input, shape index: {}]   ;;  %s2181_s2 = inlined_call_operand.vmem [shape: bf16[128,384], index: 2, kind: input, shape index: {}]   ;;  %s2182_s3 = inlined_call_operand.vmem [shape: f32[1,384], index: 3, kind: input, shape index: {}]   ;;  %s2183_s4 = inlined_call_operand.hbm [shape: bf16[2,128,128], index: 4, kind: input, shape index: {}]   ;;  %s2184_s5 = inlined_call_operand.vmem [shape: f32[2,1,128], index: 5, kind: input, shape index: {}]   ;;  %s2185_s6 = inlined_call_operand.hbm [shape: bf16[128,128], index: 6, kind: input, shape index: {}]   ;;  %s2186_s7 = inlined_call_operand.hbm [shape: bf16[2,128,128], index: 7, kind: input, shape index: {}]   ;;  %s2187_s8 = inlined_call_operand.vmem [shape: f32[2,1,128], index: 8, kind: input, shape index: {}]   ;;  %s2188_s9 = inlined_call_operand.hbm [shape: bf16[128,128], index: 9, kind: input, shape index: {}]   ;;  %s2189_s10 = inlined_call_operand.hbm [shape: bf16[2,128,128], index: 10, kind: input, shape index: {}]   ;;  %s2190_s11 = inlined_call_operand.vmem [shape: f32[2,1,128], index: 11, kind: input, shape index: {}]   ;;  %s2191_s12 = inlined_call_operand.hbm [shape: bf16[128,128], index: 12, kind: input, shape index: {}]   ;;  %s2192_s13 = inlined_call_operand.hbm [shape: f32[8,128], index: 13, kind: output, shape index: {}]  }
   0x1   :  { %19 = vsyncpa [#allocation6], 0 }
   0x2   :  { %20 = vsyncpa [#allocation9], 0 }
   0x3   :  { %21 = vsyncpa [#allocation12], 0 }
   0x4   :  { %22 = vsyncpa [#allocation4], 0  ;;  %s50_s27 = sshll.u32 %s2185_s6, 4  ;;  %s1870_s28 = smov [#allocation5]   ;;  %s51_s27 = int_to_ptr.hbm [resolvable:$true] %s50_s27 }
   0x5   :  { %s52_s29 = sshll.u32 %s1870_s28, 4  ;;  %s78_s15 = sshll.u32 %s2188_s9, 4  ;;  %s53_s29 = int_to_ptr.vmem [resolvable:$true] %s52_s29  ;;  %s79_s15 = int_to_ptr.hbm [resolvable:$true] %s78_s15 }
   0x6   :  { %s1871_s16 = smov 64   ;;  %s1872_s17 = smov 4  }
   0x7   :  { %58 = dma.hbm_to_vmem [thread:$0]  %s51_s27, 1024, %s53_s29, [#allocation6], %s1871_s16, %s1871_s16, %s1872_s17  }
   0x8   :  { %s1873_s18 = smov [#allocation8]   ;;  %s35_s6 = sshll.u32 %s2183_s4, 4  ;;  %s36_s6 = int_to_ptr.hbm [resolvable:$true] %s35_s6 }
   0x9   :  { %s80_s19 = sshll.u32 %s1873_s18, 4  ;;  %s63_s23 = sshll.u32 %s2186_s7, 4  ;;  %s81_s19 = int_to_ptr.vmem [resolvable:$true] %s80_s19  ;;  %s64_s23 = int_to_ptr.hbm [resolvable:$true] %s63_s23 }
   0xa   :  { %86 = dma.hbm_to_vmem [thread:$0]  %s79_s15, 1024, %s81_s19, [#allocation9], %s1871_s16, %s1871_s16, %s1872_s17  }
   0xb   :  { %s1874_s24 = smov [#allocation2]   ;;  %s1875_s26 = smov [#allocation7]  }
   0xc   :  { %s37_s25 = sshll.u32 %s1874_s24, 4  ;;  %s65_s4 = sshll.u32 %s1875_s26, 4  ;;  %s38_s25 = int_to_ptr.vmem [resolvable:$true] %s37_s25  ;;  %s66_s4 = int_to_ptr.vmem [resolvable:$true] %s65_s4 }
   0xd   :  { %43 = dma.hbm_to_vmem [thread:$0]  %s36_s6, 2048, %s38_s25, [#allocation3], %s1871_s16, %s1871_s16, %s1872_s17  }
   0xe   :  { %s91_s29 = sshll.u32 %s2189_s10, 4  ;;  %s106_s14 = sshll.u32 %s2191_s12, 4  ;;  %s92_s29 = int_to_ptr.hbm [resolvable:$true] %s91_s29  ;;  %s107_s14 = int_to_ptr.hbm [resolvable:$true] %s106_s14 }
   0xf   :  { %71 = dma.hbm_to_vmem [thread:$0]  %s64_s23, 2048, %s66_s4, [#allocation6], %s1871_s16, %s1871_s16, %s1872_s17  }
  0x10   :  { %s1876_s15 = smov [#allocation10]   ;;  %s1877_s19 = smov [#allocation11]  }
  0x11   :  { %s93_s18 = sshll.u32 %s1876_s15, 4  ;;  %s108_s10 = sshll.u32 %s1877_s19, 4  ;;  %s94_s18 = int_to_ptr.vmem [resolvable:$true] %s93_s18  ;;  %s109_s10 = int_to_ptr.vmem [resolvable:$true] %s108_s10 }
  0x12   :  { %99 = dma.hbm_to_vmem [thread:$0]  %s92_s29, 2048, %s94_s18, [#allocation9], %s1871_s16, %s1871_s16, %s1872_s17  }
  0x13   :  { %114 = dma.hbm_to_vmem [thread:$0]  %s107_s14, 1024, %s109_s10, [#allocation12], %s1871_s16, %s1871_s16, %s1872_s17  }
  0x14   :  { %1860 = dma.done.wait [#allocation3], 2048  }
  0x15   :  { %1861 = vsyncadd [#allocation3], 4294965248 }
  0x16   :  { %1862 = dma.done.wait [#allocation6], 3072  }
  0x17   :  { %1863 = vsyncadd [#allocation6], 4294964224 }
  0x18   :  { %1864 = dma.done.wait [#allocation9], 3072  }
  0x19   :  { %1865 = vsyncadd [#allocation9], 4294964224 }
  0x1a   :  { %1866 = dma.done.wait [#allocation12], 1024  }
  0x1b   :  { %1867 = vsyncadd [#allocation12], 4294966272  ;;  %v1268_v0 = vld [vmem:[%s2181_s2 + $0xa8] sm:$0xf]  ;;  %v1591_v1 = vld [vmem:[%s2181_s2 + $0xb0] sm:$0xf0] }
  0x1c   :  { %v1590_v2 = vld [vmem:[%s2181_s2 + $0xac] sm:$0xf]  ;;  %v1269_v3 = vor.u32 %v1591_v1, %v1268_v0  ;;  %v1270_v4 = vld [vmem:[%s2181_s2 + $0xb4] sm:$0xf0]  ;;  %v1256_v5 = vld [vmem:[%s2181_s2 + $0x90] sm:$0xf] }
  0x1d   :  { %v1588_v6 = vld [vmem:[%s2181_s2 + $0x98] sm:$0xf0]  ;;  %v1273_v7 = vor.u32 %v1590_v2, %v1270_v4  ;;  %v1587_v8 = vld [vmem:[%s2181_s2 + $0x94] sm:$0xf]  ;;  %v1258_v9 = vld [vmem:[%s2181_s2 + $0x9c] sm:$0xf0] }
  0x1e   :  { %309 = vmatpush.bf16.msra.mxu0 %v1269_v3  ;;  %v1257_v10 = vor.u32 %v1588_v6, %v1256_v5  ;;  %v1261_v11 = vor.u32 %v1587_v8, %v1258_v9  ;;  %v1244_v12 = vld [vmem:[%s2181_s2 + $0x78] sm:$0xf]  ;;  %v1585_v13 = vld [vmem:[%s2181_s2 + $0x80] sm:$0xf0]  ;;  %v1584_v14 = vld [vmem:[%s2181_s2 + $0x7c] sm:$0xf] }
  0x1f   :  { %322 = vmatpush.bf16.msra.mxu1 %v1273_v7  ;;  %v1246_v15 = vld [vmem:[%s2181_s2 + $0x84] sm:$0xf0]  ;;  %v1245_v16 = vor.u32 %v1585_v13, %v1244_v12  ;;  %v1232_v18 = vld [vmem:[%s2181_s2 + $0x60] sm:$0xf]  ;;  %v1582_v19 = vld [vmem:[%s2181_s2 + $0x68] sm:$0xf0] }
  0x20   :  { %v1249_v17 = vor.u32 %v1584_v14, %v1246_v15  ;;  %v1581_v20 = vld [vmem:[%s2181_s2 + $0x64] sm:$0xf]  ;;  %v1234_v21 = vld [vmem:[%s2181_s2 + $0x6c] sm:$0xf0]  ;;  %v1233_v22 = vor.u32 %v1582_v19, %v1232_v18  ;;  %v1592_v24 = vld [vmem:[%s2181_s2 + $0xb8] sm:$0xf0] }
  0x21   :  { %v1276_v23 = vld [vmem:[%s2181_s2 + $0xb0] sm:$0xf]  ;;  %v1264_v25 = vld [vmem:[%s2181_s2 + $0x98] sm:$0xf]  ;;  %v1237_v26 = vor.u32 %v1581_v20, %v1234_v21  ;;  %v1220_v27 = vld [vmem:[%s2181_s2 + $0x48] sm:$0xf] }
  0x22   :  { %310 = vmatpush.bf16.msra.mxu0 %v1257_v10  ;;  %v1579_v28 = vld [vmem:[%s2181_s2 + $0x50] sm:$0xf0]  ;;  %v1277_v29 = vor.u32 %v1592_v24, %v1276_v23  ;;  %v1589_v30 = vld [vmem:[%s2181_s2 + $0xa0] sm:$0xf0]  ;;  %v1578_v31 = vld [vmem:[%s2181_s2 + $0x4c] sm:$0xf] }
  0x23   :  { %323 = vmatpush.bf16.msra.mxu1 %v1261_v11  ;;  %v1222_v32 = vld [vmem:[%s2181_s2 + $0x54] sm:$0xf0]  ;;  %v1265_v33 = vor.u32 %v1589_v30, %v1264_v25  ;;  %v1221_v34 = vor.u32 %v1579_v28, %v1220_v27  ;;  %v1252_v35 = vld [vmem:[%s2181_s2 + $0x80] sm:$0xf]  ;;  %v1586_v36 = vld [vmem:[%s2181_s2 + $0x88] sm:$0xf0] }
  0x24   :  { %335 = vmatpush.bf16.msra.mxu2 %v1277_v29  ;;  %v1225_v37 = vor.u32 %v1578_v31, %v1222_v32  ;;  %v1208_v38 = vld [vmem:[%s2181_s2 + $0x30] sm:$0xf]  ;;  %v1576_v39 = vld [vmem:[%s2181_s2 + $0x38] sm:$0xf0]  ;;  %v1575_v40 = vld [vmem:[%s2181_s2 + $0x34] sm:$0xf]  ;;  %v1253_v43 = vor.u32 %v1586_v36, %v1252_v35 }
  0x25   :  { %v1210_v41 = vld [vmem:[%s2181_s2 + $0x3c] sm:$0xf0]  ;;  %v1240_v42 = vld [vmem:[%s2181_s2 + $0x68] sm:$0xf]  ;;  %v1583_v44 = vld [vmem:[%s2181_s2 + $0x70] sm:$0xf0]  ;;  %v1209_v45 = vor.u32 %v1576_v39, %v1208_v38 }
  0x26   :  { %311 = vmatpush.bf16.msra.mxu0 %v1245_v16  ;;  %v1213_v46 = vor.u32 %v1575_v40, %v1210_v41  ;;  %v1196_v47 = vld [vmem:[%s2181_s2 + $0x18] sm:$0xf]  ;;  %v1573_v48 = vld [vmem:[%s2181_s2 + $0x20] sm:$0xf0]  ;;  %v1572_v49 = vld [vmem:[%s2181_s2 + $0x1c] sm:$0xf]  ;;  %v1241_v51 = vor.u32 %v1583_v44, %v1240_v42 }
  0x27   :  { %324 = vmatpush.bf16.msra.mxu1 %v1249_v17  ;;  %v1198_v50 = vld [vmem:[%s2181_s2 + $0x24] sm:$0xf0]  ;;  %v1197_v52 = vor.u32 %v1573_v48, %v1196_v47  ;;  %v1228_v53 = vld [vmem:[%s2181_s2 + $0x50] sm:$0xf]  ;;  %v1580_v54 = vld [vmem:[%s2181_s2 + $0x58] sm:$0xf0] }
  0x28   :  { %336 = vmatpush.bf16.msra.mxu2 %v1265_v33  ;;  %v1201_v55 = vor.u32 %v1572_v49, %v1198_v50  ;;  %v1184_v56 = vld [vmem:[%s2181_s2] sm:$0xf]  ;;  %v1570_v57 = vld [vmem:[%s2181_s2 + $0x8] sm:$0xf0]  ;;  %v1569_v58 = vld [vmem:[%s2181_s2 + $0x4] sm:$0xf]  ;;  %v1229_v60 = vor.u32 %v1580_v54, %v1228_v53 }
  0x29   :  { %v1186_v59 = vld [vmem:[%s2181_s2 + $0xc] sm:$0xf0]  ;;  %v1185_v61 = vor.u32 %v1570_v57, %v1184_v56  ;;  %v2114_v62 = vld [vmem:[%s2179_s0] sm:$0xff]  ;;  %v1216_v63 = vld [vmem:[%s2181_s2 + $0x38] sm:$0xf]  ;;  %s1878_s7 = smov [#allocation13]  }
  0x2a   :  { %312 = vmatpush.bf16.msra.mxu0 %v1233_v22  ;;  %v1577_v0 = vld [vmem:[%s2181_s2 + $0x40] sm:$0xf0]  ;;  %v1189_v1 = vor.u32 %v1569_v58, %v1186_v59  ;;  %v1616_v2 = vld [vmem:[#allocation7 + $0x38] sm:$0xff]  ;;  %v172_v3 = vpack.c.bf16 %v2114_v62, %v2114_v62  ;;  %v1204_v5 = vld [vmem:[%s2181_s2 + $0x20] sm:$0xf]  ;;  %s1167_s30 = sshll.u32 %s1878_s7, 4  ;;  %s1168_s30 = int_to_ptr.vmem [resolvable:$true] %s1167_s30 }
  0x2b   :  { %325 = vmatpush.bf16.msra.mxu1 %v1237_v26  ;;  %v1217_v4 = vor.u32 %v1577_v0, %v1216_v63  ;;  %v1574_v6 = vld [vmem:[%s2181_s2 + $0x28] sm:$0xf0]  ;;  %v1615_v7 = vld [vmem:[#allocation7 + $0x30] sm:$0xff]  ;;  %v1192_v9 = vld [vmem:[%s2181_s2 + $0x8] sm:$0xf]  ;;  %s1169_s18 = sshll.u32 %s2192_s13, 4  ;;  %s1170_s18 = int_to_ptr.hbm [resolvable:$true] %s1169_s18 }
  0x2c   :  { %337 = vmatpush.bf16.msra.mxu2 %v1253_v43  ;;  %v1205_v8 = vor.u32 %v1574_v6, %v1204_v5  ;;  %v1571_v10 = vld [vmem:[%s2181_s2 + $0x10] sm:$0xf0]  ;;  %v1614_v11 = vld [vmem:[#allocation7 + $0x28] sm:$0xff]  ;;  %v1613_v13 = vld [vmem:[#allocation7 + $0x20] sm:$0xff] }
  0x2d   :  { %v1193_v12 = vor.u32 %v1571_v10, %v1192_v9  ;;  %v1612_v14 = vld [vmem:[#allocation7 + $0x18] sm:$0xff]  ;;  %v1611_v15 = vld [vmem:[#allocation7 + $0x10] sm:$0xff]  ;;  %v1610_v16 = vld [vmem:[#allocation7 + $0x8] sm:$0xff] }
  0x2e   :  { %313 = vmatpush.bf16.msra.mxu0 %v1221_v34  ;;  %v1609_v17 = vld [vmem:[#allocation7] sm:$0xff]  ;;  %v1600_v18 = vld [vmem:[#allocation2 + $0x38] sm:$0xff]  ;;  %v1599_v19 = vld [vmem:[#allocation2 + $0x30] sm:$0xff] }
  0x2f   :  { %326 = vmatpush.bf16.msra.mxu1 %v1225_v37  ;;  %442 = vmatpush.bf16.msra.mxu3 %v1600_v18  ;;  %v1598_v20 = vld [vmem:[#allocation2 + $0x28] sm:$0xff]  ;;  %v1597_v21 = vld [vmem:[#allocation2 + $0x20] sm:$0xff]  ;;  %v1596_v22 = vld [vmem:[#allocation2 + $0x18] sm:$0xff] }
  0x30   :  { %338 = vmatpush.bf16.msra.mxu2 %v1241_v51  ;;  %v2139_v23 = vld [vmem:[%s2182_s3] sm:$0x7]  ;;  %v1595_v24 = vld [vmem:[#allocation2 + $0x10] sm:$0xff]  ;;  %v1594_v27 = vld [vmem:[#allocation2 + $0x8] sm:$0xff] }
  0x31   :  { %v175_v25 = vperm.slane %v2139_v23, 0  ;;  %v176_v26 = vperm.slane %v2139_v23, 1  ;;  %v1593_v32 = vld [vmem:[#allocation2] sm:$0xff]  ;;  %v1632_v39 = vld [vmem:[#allocation10 + $0x38] sm:$0xff]  ;;  %v1631_v41 = vld [vmem:[#allocation10 + $0x30] sm:$0xff] }
  0x32   :  { %314 = vmatpush.bf16.msra.mxu0 %v1209_v45  ;;  %v1630_v42 = vld [vmem:[#allocation10 + $0x28] sm:$0xff]  ;;  %v1628_v47 = vld [vmem:[#allocation10 + $0x18] sm:$0xff]  ;;  %v1623_v53 = vld [vmem:[#allocation7 + $0x70] sm:$0xff] }
  0x33   :  { %327 = vmatpush.bf16.msra.mxu1 %v1213_v46  ;;  %443 = vmatpush.bf16.msra.mxu3 %v1599_v19  ;;  %v1629_v46 = vld [vmem:[#allocation10 + $0x20] sm:$0xff]  ;;  %v1624_v49 = vld [vmem:[#allocation7 + $0x78] sm:$0xff]  ;;  %v1626_v58 = vld [vmem:[#allocation10 + $0x8] sm:$0xff] }
  0x34   :  { %339 = vmatpush.bf16.msra.mxu2 %v1229_v60  ;;  %v1622_v59 = vld [vmem:[#allocation7 + $0x68] sm:$0xff]  ;;  %v1620_v6 = vld [vmem:[#allocation7 + $0x58] sm:$0xff] }
  0x36   :  { %315 = vmatpush.bf16.msra.mxu0 %v1197_v52  ;;  %v1627_v52 = vld [vmem:[#allocation10 + $0x10] sm:$0xff] }
  0x37   :  { %328 = vmatpush.bf16.msra.mxu1 %v1201_v55  ;;  %444 = vmatpush.bf16.msra.mxu3 %v1598_v20  ;;  %v1607_v20 = vld [vmem:[#allocation2 + $0x70] sm:$0xff] }
  0x38   :  { %340 = vmatpush.bf16.msra.mxu2 %v1217_v4 }
  0x3a   :  { %316 = vmatpush.bf16.msra.mxu0 %v1185_v61 }
  0x3b   :  { %329 = vmatpush.bf16.msra.mxu1 %v1189_v1  ;;  %445 = vmatpush.bf16.msra.mxu3 %v1597_v21  ;;  %v1625_v1 = vld [vmem:[#allocation10] sm:$0xff] }
  0x3c   :  { %341 = vmatpush.bf16.msra.mxu2 %v1205_v8  ;;  %v1619_v8 = vld [vmem:[#allocation7 + $0x50] sm:$0xff] }
  0x3d   :  { %317 = vmatmul.bf16.vlgmr.msra.gmra.mxu0 %v172_v3 }
  0x3e   :  { %330 = vmatmul.bf16.vlgmr.msra.gmra.mxu1 %v172_v3 }
  0x3f   :  { %654 = vmatpush.bf16.msrb.mxu1 %v1616_v2  ;;  %446 = vmatpush.bf16.msra.mxu3 %v1596_v22  ;;  %v1621_v2 = vld [vmem:[#allocation7 + $0x60] sm:$0xff] }
  0x40   :  { %342 = vmatpush.bf16.msra.mxu2 %v1193_v12  ;;  %v1618_v12 = vld [vmem:[#allocation7 + $0x48] sm:$0xff] }
  0x43   :  { %655 = vmatpush.bf16.msrb.mxu1 %v1615_v7  ;;  %343 = vmatmul.bf16.vlgmr.msra.gmra.mxu2 %v172_v3  ;;  %v177_v7 = vperm.slane %v2139_v23, 2  ;;  %v1606_v23 = vld [vmem:[#allocation2 + $0x68] sm:$0xff] }
  0x44   :  { %447 = vmatpush.bf16.msra.mxu3 %v1595_v24  ;;  %740 = vmatpush.bf16.msrb.mxu2 %v1624_v49  ;;  %v1605_v24 = vld [vmem:[#allocation2 + $0x60] sm:$0xff]  ;;  %v1656_v49 = vld [vmem:[#allocation8 + $0x38] sm:$0xff] }
  0x47   :  { %656 = vmatpush.bf16.msrb.mxu1 %v1614_v11 }
  0x48   :  { %448 = vmatpush.bf16.msra.mxu3 %v1594_v27  ;;  %741 = vmatpush.bf16.msrb.mxu2 %v1623_v53  ;;  %v1602_v27 = vld [vmem:[#allocation2 + $0x48] sm:$0xff] }
  0x4b   :  { %657 = vmatpush.bf16.msrb.mxu1 %v1613_v13  ;;  %v1617_v13 = vld [vmem:[#allocation7 + $0x40] sm:$0xff] }
  0x4c   :  { %449 = vmatpush.bf16.msra.mxu3 %v1593_v32  ;;  %742 = vmatpush.bf16.msrb.mxu2 %v1622_v59  ;;  %v1638_v32 = vld [vmem:[#allocation10 + $0x68] sm:$0xff] }
  0x4f   :  { %658 = vmatpush.bf16.msrb.mxu1 %v1612_v14  ;;  %v1608_v14 = vld [vmem:[#allocation2 + $0x78] sm:$0xff] }
  0x50   :  { %824 = vmatpush.bf16.msrb.mxu3 %v1632_v39  ;;  %743 = vmatpush.bf16.msrb.mxu2 %v1621_v2  ;;  %v1652_v2 = vld [vmem:[#allocation8 + $0x18] sm:$0xff] }
  0x51   :  { %549 = vmatpush.bf16.msrb.mxu0 %v1608_v14 }
  0x53   :  { %659 = vmatpush.bf16.msrb.mxu1 %v1611_v15  ;;  %v1674_v15 = vld [vmem:[%s2187_s8] ss:$0 sm:$0xff] }
  0x54   :  { %825 = vmatpush.bf16.msrb.mxu3 %v1631_v41  ;;  %744 = vmatpush.bf16.msrb.mxu2 %v1620_v6  ;;  %v1635_v41 = vld [vmem:[#allocation10 + $0x50] sm:$0xff] }
  0x55   :  { %550 = vmatpush.bf16.msrb.mxu0 %v1607_v20  ;;  %v1662_v20 = vld [vmem:[#allocation11 + $0x28] sm:$0xff] }
  0x57   :  { %660 = vmatpush.bf16.msrb.mxu1 %v1610_v16 }
  0x58   :  { %826 = vmatpush.bf16.msrb.mxu3 %v1630_v42  ;;  %745 = vmatpush.bf16.msrb.mxu2 %v1619_v8  ;;  %v1634_v42 = vld [vmem:[#allocation10 + $0x48] sm:$0xff] }
  0x59   :  { %551 = vmatpush.bf16.msrb.mxu0 %v1606_v23  ;;  %v1650_v8 = vld [vmem:[#allocation8 + $0x8] sm:$0xff]  ;;  %v1648_v23 = vld [vmem:[#allocation5 + $0x38] sm:$0xff] }
  0x5b   :  { %661 = vmatpush.bf16.msrb.mxu1 %v1609_v17 }
  0x5c   :  { %827 = vmatpush.bf16.msrb.mxu3 %v1629_v46  ;;  %746 = vmatpush.bf16.msrb.mxu2 %v1618_v12  ;;  %v1633_v46 = vld [vmem:[#allocation10 + $0x40] sm:$0xff] }
  0x5d   :  { %552 = vmatpush.bf16.msrb.mxu0 %v1605_v24  ;;  %v1677_v12 = vld [vmem:[%s2187_s8 + $0x1] ss:$0 sm:$0xff]  ;;  %v1659_v24 = vld [vmem:[#allocation11 + $0x10] sm:$0xff] }
  0x5f   :  { %988 = vmatpush.bf16.msra.mxu1 %v1648_v23 }
  0x60   :  { %828 = vmatpush.bf16.msrb.mxu3 %v1628_v47  ;;  %747 = vmatpush.bf16.msrb.mxu2 %v1617_v13 }
  0x64   :  { %829 = vmatpush.bf16.msrb.mxu3 %v1627_v52 }
  0x68   :  { %830 = vmatpush.bf16.msrb.mxu3 %v1626_v58 }
  0x6c   :  { %831 = vmatpush.bf16.msrb.mxu3 %v1625_v1 }
  0xba   :  { %v318_v28 = vpop.f32.mrf.mxu0 }
  0xbb   :  { %v319_v29 = vadd.f32 %v318_v28, %v175_v25  ;;  %v331_v30 = vpop.f32.mrf.mxu1  ;;  %v1604_v25 = vld [vmem:[#allocation2 + $0x58] sm:$0xff]  ;;  %v1601_v28 = vld [vmem:[#allocation2 + $0x40] sm:$0xff] }
  0xbc   :  { %v332_v31 = vadd.f32 %v331_v30, %v176_v26  ;;  %553 = vmatpush.bf16.msrb.mxu0 %v1604_v25  ;;  %v1603_v26 = vld [vmem:[#allocation2 + $0x50] sm:$0xff] }
  0xbd   :  { %v348_v33 = vand.u32 2147483647, %v319_v29  ;;  %vm368_vm4 = vcmp.ge.f32.partialorder %v319_v29, 0.0  ;;  %v1640_v29 = vld [vmem:[#allocation10 + $0x78] sm:$0xff]  ;;  %v1639_v30 = vld [vmem:[#allocation10 + $0x70] sm:$0xff] }
  0xbe   :  { %v2143_v34 = vmax.f32 %v332_v31, 0.0  ;;  %v1675_v31 = vld [vmem:[%s2184_s5] ss:$0 sm:$0xff]  ;;  %v1647_v25 = vld [vmem:[#allocation5 + $0x30] sm:$0xff] }
  0xbf   :  { %v349_v35 = vsub.f32 0.0, %v348_v33  ;;  %989 = vmatpush.bf16.msra.mxu1 %v1647_v25 }
  0xc0   :  { %v601_v36 = vpack.c.bf16 %v2143_v34, %v2143_v34  ;;  %554 = vmatpush.bf16.msrb.mxu0 %v1603_v26  ;;  %v1658_v26 = vld [vmem:[#allocation11 + $0x8] sm:$0xff] }
  0xc1   :  { %v350_v37 = vmul.f32 1.442695, %v349_v35  ;;  %v1637_v35 = vld [vmem:[#allocation10 + $0x60] sm:$0xff] }
  0xc2   :  { %662 = vmatmul.bf16.vlgmr.msrb.gmra.mxu1 %v601_v36  ;;  %v320_v38 = vpop.f32.mrf.mxu0 }
  0xc3   :  { %1680 = vpow2.f32 %v350_v37  ;;  %v333_v40 = vpop.f32.mrf.mxu1 }
  0xc4   :  { %555 = vmatpush.bf16.msrb.mxu0 %v1602_v27  ;;  %v1636_v40 = vld [vmem:[#allocation10 + $0x58] sm:$0xff]  ;;  %v1646_v27 = vld [vmem:[#allocation5 + $0x28] sm:$0xff] }
  0xc5   :  { %990 = vmatpush.bf16.msra.mxu1 %v1646_v27 }
  0xc6   :  { %v344_v45 = vpop.f32.mrf.mxu2 }
  0xc7   :  { %v345_v9 = vadd.f32 %v344_v45, %v177_v7 }
  0xc8   :  { %556 = vmatpush.bf16.msrb.mxu0 %v1601_v28  ;;  %v1645_v28 = vld [vmem:[#allocation5 + $0x20] sm:$0xff] }
  0xc9   :  { %v1681_v43 = vpop.eup %1680  ;;  %v372_v10 = vmax.f32 %v345_v9, 0.0  ;;  %v1649_v9 = vld [vmem:[#allocation8] sm:$0xff]  ;;  %991 = vmatpush.bf16.msra.mxu1 %v1645_v28 }
  0xca   :  { %v352_v44 = vadd.f32 1.0, %v1681_v43 }
  0xcb   :  { %v771_v11 = vpack.c.bf16 %v372_v10, %v372_v10  ;;  %v1664_v10 = vld [vmem:[#allocation11 + $0x38] sm:$0xff] }
  0xcc   :  { %1682 = vrcp.f32 %v352_v44  ;;  %v364_v55 = vand.u32 2147483648, %v352_v44  ;;  %v362_v57 = vand.u32 2147483647, %v352_v44  ;;  %vm358_vm1 = vweird.f32 %v352_v44  ;;  %909 = vmatpush.bf16.msra.mxu0 %v1640_v29  ;;  %1083 = vmatpush.bf16.msra.mxu2 %v1664_v10  ;;  %v1644_v29 = vld [vmem:[#allocation5 + $0x18] sm:$0xff] }
  0xcd   :  { %992 = vmatpush.bf16.msra.mxu1 %v1644_v29 }
  0xce   :  { %v346_v51 = vpop.f32.mrf.mxu2  ;;  %v365_v61 = vor.u32 1.1754944e-38, %v364_v55  ;;  %vm363_vm3 = vcmp.eq.f32.partialorder %v362_v57, 8.507059e+37 }
  0xcf   :  { %v1655_v51 = vld [vmem:[#allocation8 + $0x30] sm:$0xff] }
  0xd0   :  { %910 = vmatpush.bf16.msra.mxu0 %v1639_v30  ;;  %v1643_v30 = vld [vmem:[#allocation5 + $0x10] sm:$0xff] }
  0xd1   :  { %993 = vmatpush.bf16.msra.mxu1 %v1643_v30 }
  0xd2   :  { %v1683_v48 = vpop.eup %1682 }
  0xd3   :  { %v354_v50 = vmul.f32 %v1683_v48, %v352_v44  ;;  %vm359_vm0 = vweird.f32 %v1683_v48 }
  0xd4   :  { %vm360_vm2 = vmor %vm358_vm1, %vm359_vm0  ;;  %911 = vmatpush.bf16.msra.mxu0 %v1638_v32 }
  0xd5   :  { %v355_v54 = vsub.f32 1.0, %v354_v50 }
  0xd7   :  { %v356_v56 = vmul.f32 %v1683_v48, %v355_v54 }
  0xd8   :  { %912 = vmatpush.bf16.msra.mxu0 %v1637_v35 }
  0xd9   :  { %v357_v60 = vadd.f32 %v1683_v48, %v356_v56  ;;  %v1654_v56 = vld [vmem:[#allocation8 + $0x28] sm:$0xff] }
  0xdb   :  { %v361_v63 = vsel %vm360_vm2, %v1683_v48, %v357_v60 }
  0xdc   :  { %v366_v0 = vsel %vm363_vm3, %v365_v61, %v361_v63  ;;  %913 = vmatpush.bf16.msra.mxu0 %v1636_v40  ;;  %v1653_v61 = vld [vmem:[#allocation8 + $0x20] sm:$0xff] }
  0xdd   :  { %v369_v3 = vmul.f32 %v1681_v43, %v366_v0  ;;  %v1679_v40 = vld [vmem:[%s2190_s11 + $0x1] ss:$0 sm:$0xff] }
  0xdf   :  { %v370_v4 = vsel %vm368_vm4, %v366_v0, %v369_v3  ;;  %v1676_v3 = vld [vmem:[%s2190_s11] ss:$0 sm:$0xff] }
  0xe0   :  { %v389_v5 = vpack.c.bf16 %v370_v4, %v370_v4  ;;  %914 = vmatpush.bf16.msra.mxu0 %v1635_v41  ;;  %v1651_v4 = vld [vmem:[#allocation8 + $0x10] sm:$0xff] }
  0xe2   :  { %450 = vmatmul.bf16.vlgmr.msra.gmra.mxu3 %v389_v5 }
  0xe3   :  { %1145 = vmatpush.bf16.msra.mxu3 %v1656_v49 }
  0xe4   :  { %915 = vmatpush.bf16.msra.mxu0 %v1634_v42 }
  0xe7   :  { %1146 = vmatpush.bf16.msra.mxu3 %v1655_v51 }
  0xe8   :  { %916 = vmatpush.bf16.msra.mxu0 %v1633_v46 }
  0xeb   :  { %1147 = vmatpush.bf16.msra.mxu3 %v1654_v56 }
  0xef   :  { %1148 = vmatpush.bf16.msra.mxu3 %v1653_v61 }
  0xf2   :  { %832 = vmatmul.bf16.vlgmr.msrb.gmra.mxu3 %v771_v11  ;;  %v1663_v11 = vld [vmem:[#allocation11 + $0x30] sm:$0xff] }
  0xf3   :  { %1149 = vmatpush.bf16.msra.mxu3 %v1652_v2  ;;  %1084 = vmatpush.bf16.msra.mxu2 %v1663_v11 }
  0xf7   :  { %1150 = vmatpush.bf16.msra.mxu3 %v1651_v4  ;;  %1085 = vmatpush.bf16.msra.mxu2 %v1662_v20 }
  0xfb   :  { %1151 = vmatpush.bf16.msra.mxu3 %v1650_v8 }
  0xff   :  { %1152 = vmatpush.bf16.msra.mxu3 %v1649_v9 }
 0x13f   :  { %v663_v16 = vpop.f32.mrf.mxu1 }
 0x140   :  { %v664_v17 = vadd.f32 %v1674_v15, %v663_v16 }
 0x142   :  { %v667_v18 = vmax.f32 %v664_v17, 0.0 }
 0x144   :  { %v2152_v19 = vadd.f32 %v667_v18, %v2143_v34 }
 0x146   :  { %v686_v21 = vpack.c.bf16 %v2152_v19, %v2152_v19 }
 0x147   :  { %v665_v22 = vpop.f32.mrf.mxu1 }
 0x148   :  { %748 = vmatmul.bf16.vlgmr.msrb.gmra.mxu2 %v686_v21  ;;  %v1661_v21 = vld [vmem:[#allocation11 + $0x20] sm:$0xff]  ;;  %v1660_v22 = vld [vmem:[#allocation11 + $0x18] sm:$0xff] }
 0x149   :  { %1086 = vmatpush.bf16.msra.mxu2 %v1661_v21 }
 0x14d   :  { %1087 = vmatpush.bf16.msra.mxu2 %v1660_v22 }
 0x151   :  { %1088 = vmatpush.bf16.msra.mxu2 %v1659_v24 }
 0x155   :  { %1089 = vmatpush.bf16.msra.mxu2 %v1658_v26 }
 0x165   :  { %v451_v33 = vpop.f32.mrf.mxu3 }
 0x166   :  { %v452_v34 = vadd.f32 %v1675_v31, %v451_v33  ;;  %v1678_v31 = vld [vmem:[%s2184_s5 + $0x1] ss:$0 sm:$0xff]  ;;  %v1642_v33 = vld [vmem:[#allocation5 + $0x8] sm:$0xff] }
 0x167   :  { %994 = vmatpush.bf16.msra.mxu1 %v1642_v33 }
 0x168   :  { %v455_v36 = vand.u32 2147483647, %v452_v34  ;;  %vm475_vm9 = vcmp.ge.f32.partialorder %v452_v34, 0.0 }
 0x16a   :  { %v456_v37 = vsub.f32 0.0, %v455_v36  ;;  %v1641_v36 = vld [vmem:[#allocation5] sm:$0xff] }
 0x16b   :  { %995 = vmatpush.bf16.msra.mxu1 %v1641_v36 }
 0x16c   :  { %v457_v38 = vmul.f32 1.442695, %v456_v37 }
 0x16d   :  { %v453_v39 = vpop.f32.mrf.mxu3 }
 0x16e   :  { %1684 = vpow2.f32 %v457_v38 }
 0x174   :  { %v1685_v43 = vpop.eup %1684 }
 0x175   :  { %v459_v44 = vadd.f32 1.0, %v1685_v43  ;;  %v833_v45 = vpop.f32.mrf.mxu3 }
 0x176   :  { %v834_v5 = vadd.f32 %v1676_v3, %v833_v45 }
 0x177   :  { %1686 = vrcp.f32 %v459_v44  ;;  %v471_v53 = vand.u32 2147483648, %v459_v44  ;;  %v469_v55 = vand.u32 2147483647, %v459_v44  ;;  %vm465_vm6 = vweird.f32 %v459_v44 }
 0x178   :  { %v837_v6 = vmax.f32 %v834_v5, 0.0  ;;  %v1159_v5 = vld [vmem:[%s2180_s1] sm:$0xff] }
 0x179   :  { %v472_v58 = vor.u32 1.1754944e-38, %v471_v53  ;;  %vm470_vm8 = vcmp.eq.f32.partialorder %v469_v55, 8.507059e+37 }
 0x17a   :  { %v855_v7 = vpack.c.bf16 %v837_v6, %v837_v6 }
 0x17d   :  { %v1687_v47 = vpop.eup %1686  ;;  %v835_v48 = vpop.f32.mrf.mxu3 }
 0x17e   :  { %v461_v50 = vmul.f32 %v1687_v47, %v459_v44  ;;  %vm466_vm5 = vweird.f32 %v1687_v47 }
 0x17f   :  { %vm467_vm7 = vmor %vm465_vm6, %vm466_vm5 }
 0x180   :  { %v462_v52 = vsub.f32 1.0, %v461_v50 }
 0x182   :  { %v463_v54 = vmul.f32 %v1687_v47, %v462_v52 }
 0x184   :  { %v464_v57 = vadd.f32 %v1687_v47, %v463_v54 }
 0x186   :  { %v468_v59 = vsel %vm467_vm7, %v1687_v47, %v464_v57 }
 0x187   :  { %v473_v60 = vsel %vm470_vm8, %v472_v58, %v468_v59 }
 0x188   :  { %v476_v63 = vmul.f32 %v1685_v43, %v473_v60 }
 0x18a   :  { %v477_v0 = vsel %vm475_vm9, %v473_v60, %v476_v63 }
 0x18b   :  { %v495_v1 = vpack.c.bf16 %v477_v0, %v477_v0 }
 0x18d   :  { %557 = vmatmul.bf16.vlgmr.msrb.gmra.mxu0 %v495_v1 }
 0x19d   :  { %917 = vmatmul.bf16.vlgmr.msra.gmra.mxu0 %v855_v7 }
 0x1cb   :  { %v749_v13 = vpop.f32.mrf.mxu2 }
 0x1cc   :  { %v750_v14 = vadd.f32 %v1677_v12, %v749_v13 }
 0x1ce   :  { %v753_v15 = vmax.f32 %v750_v14, 0.0 }
 0x1d0   :  { %v754_v16 = vadd.f32 %v753_v15, %v2152_v19  ;;  %v1657_v19 = vld [vmem:[#allocation11] sm:$0xff] }
 0x1d1   :  { %1090 = vmatpush.bf16.msra.mxu2 %v1657_v19 }
 0x1d2   :  { %v1017_v17 = vpack.c.bf16 %v754_v16, %v754_v16 }
 0x1d3   :  { %v751_v18 = vpop.f32.mrf.mxu2 }
 0x1d4   :  { %1153 = vmatmul.bf16.vlgmr.msra.gmra.mxu3 %v1017_v17 }
 0x20a   :  { %v558_v32 = vpop.f32.mrf.mxu0 }
 0x20b   :  { %v559_v34 = vadd.f32 %v1678_v31, %v558_v32 }
 0x20d   :  { %v562_v35 = vand.u32 2147483647, %v559_v34  ;;  %vm582_vm14 = vcmp.ge.f32.partialorder %v559_v34, 0.0 }
 0x20f   :  { %v563_v37 = vsub.f32 0.0, %v562_v35 }
 0x211   :  { %v564_v38 = vmul.f32 1.442695, %v563_v37 }
 0x212   :  { %v560_v39 = vpop.f32.mrf.mxu0 }
 0x213   :  { %1688 = vpow2.f32 %v564_v38 }
 0x219   :  { %v1689_v41 = vpop.eup %1688 }
 0x21a   :  { %v566_v42 = vadd.f32 1.0, %v1689_v41  ;;  %v918_v43 = vpop.f32.mrf.mxu0 }
 0x21b   :  { %v919_v44 = vadd.f32 %v1679_v40, %v918_v43 }
 0x21c   :  { %1690 = vrcp.f32 %v566_v42  ;;  %v578_v51 = vand.u32 2147483648, %v566_v42  ;;  %v576_v53 = vand.u32 2147483647, %v566_v42  ;;  %vm572_vm11 = vweird.f32 %v566_v42 }
 0x21d   :  { %v922_v45 = vmax.f32 %v919_v44, 0.0 }
 0x21e   :  { %v579_v55 = vor.u32 1.1754944e-38, %v578_v51  ;;  %vm577_vm13 = vcmp.eq.f32.partialorder %v576_v53, 8.507059e+37 }
 0x21f   :  { %v1034_v46 = vpack.c.bf16 %v922_v45, %v922_v45 }
 0x221   :  { %1091 = vmatmul.bf16.vlgmr.msra.gmra.mxu2 %v1034_v46 }
 0x222   :  { %v1691_v47 = vpop.eup %1690  ;;  %v920_v48 = vpop.f32.mrf.mxu0 }
 0x223   :  { %v568_v49 = vmul.f32 %v1691_v47, %v566_v42  ;;  %vm573_vm10 = vweird.f32 %v1691_v47 }
 0x224   :  { %vm574_vm12 = vmor %vm572_vm11, %vm573_vm10 }
 0x225   :  { %v569_v50 = vsub.f32 1.0, %v568_v49 }
 0x227   :  { %v570_v52 = vmul.f32 %v1691_v47, %v569_v50 }
 0x229   :  { %v571_v54 = vadd.f32 %v1691_v47, %v570_v52 }
 0x22b   :  { %v575_v56 = vsel %vm574_vm12, %v1691_v47, %v571_v54 }
 0x22c   :  { %v580_v57 = vsel %vm577_vm13, %v579_v55, %v575_v56 }
 0x22d   :  { %v583_v58 = vmul.f32 %v1689_v41, %v580_v57 }
 0x22f   :  { %v584_v59 = vsel %vm582_vm14, %v580_v57, %v583_v58 }
 0x230   :  { %v939_v60 = vpack.c.bf16 %v584_v59, %v584_v59 }
 0x232   :  { %996 = vmatmul.bf16.vlgmr.msra.gmra.mxu1 %v939_v60 }
 0x257   :  { %v1154_v61 = vpop.f32.mrf.mxu3 }
 0x25f   :  { %v1156_v63 = vpop.f32.mrf.mxu3 }
 0x2a4   :  { %v1092_v0 = vpop.f32.mrf.mxu2 }
 0x2a5   :  { %v1096_v1 = vmul.f32 %v1092_v0, %v2114_v62 }
 0x2a7   :  { %v1155_v3 = vadd.f32 %v1154_v61, %v1096_v1 }
 0x2ac   :  { %v1094_v2 = vpop.f32.mrf.mxu2 }
 0x2af   :  { %v997_v4 = vpop.f32.mrf.mxu1 }
 0x2b0   :  { %v1158_v6 = vmul.f32 %v1155_v3, %v997_v4 }
 0x2b2   :  { %v1160_v7 = vadd.f32 %v1159_v5, %v1158_v6 }
 0x2b4   :  { %1161 = vst [vmem:[#allocation13] sm:$0xff] %v1160_v7 }
 0x2b5   :  { %1172 = dma.vmem_to_hbm [thread:$0]  %s1168_s30, 128, %s1170_s18, [#allocation4]  }
 0x2b7   :  { %v999_v62 = vpop.f32.mrf.mxu1 }
 0x2b8   :  { %1868 = dma.done.wait [#allocation4], 128  }
 0x2b9   :  { %1869 = vsyncadd [#allocation4], 4294967168 }
 0x2ba   :  { %1177 = vsyncpa [#allocation3], 1 }
 0x2bb   :  { %1178 = vsyncpa [#allocation6], 1 }
 0x2bc   :  { %1179 = vsyncpa [#allocation9], 1 }
 0x2bd   :  { %1180 = vsyncpa [#allocation12], 1 }
 0x2be   :  { %1181 = vsyncpa [#allocation4], 1 }

</bundles_post_ra>
